<compile_context>
chip_gen: v5e
topology: v5e:2x2
jax: 0.10.0
libtpu: 0.0.40
codegen_flags: <defaults>
</compile_context>

<pallas_src>
import functools

import jax
import jax.numpy as jnp
import numpy as np
from jax.experimental import pallas as pl
from jax.experimental.pallas import tpu as pltpu


# --------------------------- TPU / VMEM configuration ------------------------ #

_TPU_CFG = None


def _tpu_config():
    """(vmem_capacity_bytes, tensorcores_per_chip) with conservative fallbacks."""
    global _TPU_CFG
    if _TPU_CFG is not None:
        return _TPU_CFG
    vmem_cap = 64 * 1024 * 1024          # conservative default (= v7x physical)
    n_cores = 1
    try:
        info = pltpu.get_tpu_info()
        cap = getattr(info, "vmem_capacity_bytes", None)
        if cap:
            vmem_cap = int(cap)
        for attr in ("num_cores", "core_count", "tensorcores_per_chip",
                     "num_tensorcores"):
            val = getattr(info, attr, None)
            if val:
                n_cores = max(n_cores, int(val))
                break
    except Exception:
        pass
    if n_cores == 1:
        try:
            kind = jax.devices()[0].device_kind.lower()
            if "v7" in kind:             # v7x: 2 TensorCores per chip
                n_cores = 2
        except Exception:
            pass
    _TPU_CFG = (vmem_cap, n_cores)
    return _TPU_CFG


def _vmem_limit_bytes():
    cap, _ = _tpu_config()
    if cap >= 96 * 1024 * 1024:
        # v5e/v6e (128 MiB physical): use most of it instead of a fixed 48 MiB.
        return 100 * 1024 * 1024
    # v7x (64 MiB physical) or unknown: leave ~16 MiB headroom for internal scratch.
    return max(32 * 1024 * 1024, min(cap - 16 * 1024 * 1024, (cap * 3) // 4))


def _tile_budget():
    return int(_vmem_limit_bytes() * 0.85)


def _num_cores():
    return _tpu_config()[1]


# ------------------------------ tiling helpers ------------------------------- #

def _divisors_desc(n):
    small, large = [], []
    i = 1
    while i * i <= n:
        if n % i == 0:
            small.append(i)
            if i != n // i:
                large.append(n // i)
        i += 1
    return sorted(small + large, reverse=True)


def _legal_divs(dim, *, align, cap=None):
    """Divisors of `dim` legal for a block axis: multiples of `align` (8 for the
    second-to-last dim, 128 for the last dim), plus `dim` itself (full-dim blocks
    are always legal).  Descending."""
    legal = {d for d in _divisors_desc(dim) if d % align == 0}
    legal.add(dim)
    out = sorted(legal, reverse=True)
    if cap is not None:
        capped = [d for d in out if d <= cap]
        out = capped if capped else [out[-1]]
    return out


def _matmul_tiles(N, K, M, budget, xbytes, wbytes, obytes):
    """Row/col tiles for (N,K)@(K,M): maximize tile area within the VMEM budget."""
    def vmem_bytes(rc, ct):
        return (2 * rc * K * xbytes        # x block, double-buffered
                + 2 * K * ct * wbytes      # weight tile (counted double-buffered)
                + 2 * ct * 4               # bias tile
                + 2 * rc * ct * obytes     # output tile, double-buffered
                + rc * ct * 4)             # f32 accumulator headroom
    rc_opts = _legal_divs(N, align=8, cap=2048)
    ct_opts = _legal_divs(M, align=128, cap=2048)
    pairs = sorted(((rc, ct) for rc in rc_opts for ct in ct_opts),
                   key=lambda p: (p[0] * p[1], p[0]), reverse=True)
    for rc, ct in pairs:
        if vmem_bytes(rc, ct) <= budget:
            return rc, ct
    return rc_opts[-1], ct_opts[-1]


def _recurrence_tiles(T, B, H, Hn, budget, fuse_next):
    """Time-chunk / batch-block for the serial recurrence, VMEM-budget aware."""
    def vmem_bytes(tc, bb):
        t = (2 * tc * bb * H * 2           # P input (bf16, double-buffered)
             + 2 * tc * bb * Hn * 2        # y / P_next output (bf16, double-buffered)
             + 2 * H * H * 2               # W_hh^T (counted double even if Buffered(1))
             + 2 * bb * H * 4              # h0 input
             + 2 * bb * H * 4              # h_T output
             + bb * H * 4                  # f32 carry scratch
             + 4 * bb * max(H, Hn) * 4)    # per-step f32 temporaries headroom
        if fuse_next:
            t += 2 * H * Hn * 2 + 2 * Hn * 4
        return t

    bb_opts = _legal_divs(B, align=8)
    if _num_cores() > 1 and B >= 16:
        # v7x: keep >= 2 batch blocks so the "parallel" axis feeds both TensorCores.
        pref = [b for b in bb_opts if B // b >= 2]
        if pref:
            bb_opts = pref
    tc_opts = [d for d in _divisors_desc(T) if d <= 256] or [T]
    for bb in bb_opts:                     # prefer the largest batch block that fits
        for tc in tc_opts:
            if vmem_bytes(tc, bb) <= budget:
                return tc, bb
    return tc_opts[-1], bb_opts[-1]


def _pick_unroll(tc, bb, h):
    """Unroll the serial loop, but back off when the f32 carry is large (spills)."""
    carry_bytes = bb * h * 4
    if carry_bytes > 64 * 1024:
        max_u = 2
    elif carry_bytes > 16 * 1024:
        max_u = 4
    else:
        max_u = 8
    if tc <= max_u:
        return tc
    for u in (max_u, 4, 2):
        if u <= max_u and tc % u == 0:
            return u
    return 1


def _spec(block_shape, index_map, bufs=None):
    """BlockSpec; optionally single-buffer grid-invariant inputs (guarded)."""
    if bufs is not None:
        try:
            return pl.BlockSpec(block_shape, index_map,
                                pipeline_mode=pl.Buffered(bufs))
        except Exception:
            pass
    return pl.BlockSpec(block_shape, index_map)


# --------------------- tiled matmul (+bias, optional tanh) ------------------- #

def matmul_bias_kernel(x_ref, w_ref, b_ref, o_ref, *, apply_tanh: bool):
    """o = act(x) @ w + b for one (row_block, col_block) grid step.

    x_ref: (Rc, K)  bf16;  w_ref: (K, Ct) bf16;  b_ref: (1, Ct) f32;
    o_ref: (Rc, Ct) bf16/f32 lane-dense output tile.  f32 accumulation on the MXU.
    """
    x = x_ref[...]
    if apply_tanh:
        # tanh(dropout(embedding)) of the original model, computed in f32 (EUP) and
        # recast to bf16 for the MXU dot.
        x = jnp.tanh(x.astype(jnp.float32)).astype(w_ref.dtype)
    out = jnp.dot(x, w_ref[...], preferred_element_type=jnp.float32) + b_ref[...]
    o_ref[...] = out.astype(o_ref.dtype)


def matmul_bias(x, w_t, bias, *, apply_input_tanh=False, out_dtype=jnp.bfloat16):
    """(N, K) @ (K, M) + bias, tiled over rows and lane-dense output columns."""
    N, K = x.shape
    M = w_t.shape[-1]
    xb = x.dtype.itemsize
    wb = w_t.dtype.itemsize
    ob = jnp.dtype(out_dtype).itemsize
    Rc, Ct = _matmul_tiles(N, K, M, _tile_budget(), xb, wb, ob)
    single_col = (Ct == M)                 # weight/bias index map is then constant
    kernel = functools.partial(matmul_bias_kernel, apply_tanh=apply_input_tanh)
    cost = pl.CostEstimate(
        flops=2 * N * K * M,
        transcendentals=N * K if apply_input_tanh else 0,
        bytes_accessed=N * K * xb + K * M * wb + M * 4 + N * M * ob)
    return pl.pallas_call(
        kernel,
        out_shape=jax.ShapeDtypeStruct((N, M), out_dtype),
        grid=(N // Rc, M // Ct),
        in_specs=[
            pl.BlockSpec((Rc, K), lambda r, c: (r, 0)),   # resident across col tiles
            _spec((K, Ct), lambda r, c: (0, c), bufs=1 if single_col else None),
            _spec((1, Ct), lambda r, c: (0, c), bufs=1 if single_col else None),
        ],
        out_specs=pl.BlockSpec((Rc, Ct), lambda r, c: (r, c)),
        compiler_params=pltpu.CompilerParams(
            dimension_semantics=("parallel", "parallel"),
            vmem_limit_bytes=_vmem_limit_bytes()),
        cost_estimate=cost,
    )(x, w_t, bias)


# ----------------------- serial RNN recurrence kernel ------------------------ #

def rnn_recurrence_kernel(*refs, unroll: int, fuse_next: bool):
    """One (batch_block, time_chunk) grid step:  h = tanh(P[t] + h @ W_hh^T).

    Inputs : p (Tc,Bb,H) bf16, h0 (Bb,H) f32, whh (H,H) bf16,
             [wih_next (H,Hn) bf16, b_next (1,Hn) f32]  when fuse_next.
    Outputs: out (Tc,Bb,Hn) bf16  (= y, or the fused next-layer projection P_next),
             ht (Bb,H) f32 (written on the last time chunk).
    Scratch: h_scratch (Bb,H) f32 carry across time chunks.
    """
    if fuse_next:
        p_ref, h0_ref, whh_ref, wih_n_ref, bn_ref, out_ref, ht_ref, h_scratch = refs
    else:
        p_ref, h0_ref, whh_ref, out_ref, ht_ref, h_scratch = refs
        wih_n_ref = bn_ref = None

    t_idx = pl.program_id(1)

    @pl.when(t_idx == 0)
    def _():
        h_scratch[...] = h0_ref[...]

    whh = whh_ref[...]                       # bf16, hoisted out of the time loop
    if fuse_next:
        wih_n = wih_n_ref[...]               # bf16, hoisted
        b_n = bn_ref[...]                    # f32 (1, Hn)
    tc = p_ref.shape[0]

    def body(t, h):
        # h: (Bb, H) f32 carry; the MXU dot runs in bf16 with f32 accumulation.
        h_bf = h.astype(jnp.bfloat16)
        pre = p_ref[t].astype(jnp.float32) + jnp.dot(
            h_bf, whh, preferred_element_type=jnp.float32)
        h_new = jnp.tanh(pre)                # f32 tanh (EUP)
        y_bf = h_new.astype(jnp.bfloat16)
        if fuse_next:
            # Next layer's input projection, fused: skips an HBM round trip of y.
            p_next = jnp.dot(y_bf, wih_n,
                             preferred_element_type=jnp.float32) + b_n
            out_ref[t] = p_next.astype(out_ref.dtype)
        else:
            out_ref[t] = y_bf.astype(out_ref.dtype)
        return h_new

    h_last = jax.lax.fori_loop(0, tc, body, h_scratch[...], unroll=unroll)
    h_scratch[...] = h_last

    @pl.when(t_idx == pl.num_programs(1) - 1)
    def _():
        ht_ref[...] = h_last.astype(ht_ref.dtype)


def rnn_recurrence(p_tm, h0_l, whh_t, *, wih_next=None, b_next=None):
    """p_tm: (T,B,H) time-major pre-projected inputs (bf16).

    Returns (out (T,B,Hn) bf16, h_T (B,H) f32); out is y for the last layer or the
    fused next-layer projection P_next for intermediate layers."""
    T, B, H = p_tm.shape
    fuse = wih_next is not None
    Hn = wih_next.shape[-1] if fuse else H
    Tc, Bb = _recurrence_tiles(T, B, H, Hn, _tile_budget(), fuse)
    unroll = _pick_unroll(Tc, Bb, H)
    kernel = functools.partial(rnn_recurrence_kernel, unroll=unroll, fuse_next=fuse)

    in_arrays = [p_tm, h0_l, whh_t]
    in_specs = [
        pl.BlockSpec((Tc, Bb, H), lambda b, t: (t, b, 0)),
        pl.BlockSpec((Bb, H), lambda b, t: (b, 0)),
        _spec((H, H), lambda b, t: (0, 0), bufs=1),        # grid-invariant W_hh^T
    ]
    if fuse:
        in_arrays += [wih_next, b_next]
        in_specs += [_spec((H, Hn), lambda b, t: (0, 0), bufs=1),
                     _spec((1, Hn), lambda b, t: (0, 0), bufs=1)]

    flops = 2 * T * B * H * H + (2 * T * B * H * Hn if fuse else 0)
    bytes_accessed = (T * B * H * 2 + T * B * Hn * 2 + H * H * 2
                      + (H * Hn * 2 if fuse else 0) + 2 * B * H * 4)
    cost = pl.CostEstimate(flops=flops, transcendentals=T * B * H,
                           bytes_accessed=bytes_accessed)

    out, h_t = pl.pallas_call(
        kernel,
        out_shape=(jax.ShapeDtypeStruct((T, B, Hn), jnp.bfloat16),
                   jax.ShapeDtypeStruct((B, H), jnp.float32)),
        grid=(B // Bb, T // Tc),
        in_specs=in_specs,
        out_specs=(
            pl.BlockSpec((Tc, Bb, Hn), lambda b, t: (t, b, 0)),
            pl.BlockSpec((Bb, H), lambda b, t: (b, 0)),    # revisited across time
        ),
        scratch_shapes=[pltpu.VMEM((Bb, H), jnp.float32)],
        compiler_params=pltpu.CompilerParams(
            dimension_semantics=("parallel", "arbitrary"),
            vmem_limit_bytes=_vmem_limit_bytes()),
        cost_estimate=cost,
    )(*in_arrays)
    return out, h_t


# ------------------------------ Model forward -------------------------------- #

def rnn_model_forward(params, tokens, h0):
    """tokens: (B, T) int32; h0: (L, B, H) float32.
    Returns (logits (B, T, V) f32, h_n (L, B, H) f32), matching the PyTorch module."""
    B, T = tokens.shape
    H = h0.shape[-1]
    L = len(params["rnn"])

    # Embedding gather directly into time-major layout (transpose the tiny id
    # matrix, not the activations).  Glue op, handled by XLA.
    emb_tm = jnp.take(params["embedding"], tokens.T, axis=0)       # (T, B, E) bf16
    x2d = emb_tm.reshape(T * B, emb_tm.shape[-1])

    # Layer-0 input projection P0 = tanh(x) @ W_ih^T + b, hoisted out of the serial
    # recurrence into one big pipelined MXU matmul (tanh fused, f32 acc).
    wih0, _, b0 = params["rnn"][0]
    p_tm = matmul_bias(x2d, wih0, b0, apply_input_tanh=True).reshape(T, B, H)

    h_finals = []
    y_tm = None
    for layer in range(L):
        _, whh_t, _ = params["rnn"][layer]
        if layer + 1 < L:
            # Intermediate layer: emit the NEXT layer's projection straight from the
            # recurrence kernel (no HBM round trip of y).
            wih_n, _, b_n = params["rnn"][layer + 1]
            p_tm, h_t = rnn_recurrence(p_tm, h0[layer], whh_t,
                                       wih_next=wih_n, b_next=b_n)
        else:
            y_tm, h_t = rnn_recurrence(p_tm, h0[layer], whh_t)
        h_finals.append(h_t)

    # Vocab projection in batch-major order so the logits land directly in (B,T,V).
    # The only activation transpose is this bf16 (T,B,H) tensor (V/H x smaller than
    # the logits).
    y_bm = jnp.transpose(y_tm, (1, 0, 2)).reshape(B * T, H)
    logits2d = matmul_bias(y_bm, params["lin_w_t"], params["lin_b"],
                           out_dtype=jnp.float32)
    V = logits2d.shape[-1]
    logits = logits2d.reshape(B, T, V)
    h_n = jnp.stack(h_finals, axis=0)                               # (L, B, H)
    return logits, h_n


# --------------------------- Pure-JAX reference ------------------------------ #

def rnn_model_reference(params, tokens, h0):
    """Mirrors the kernels' dtype flow (bf16 storage, f32 accumulation/carry)."""
    emb = jnp.take(params["embedding"], tokens.T, axis=0)           # (T, B, E) bf16
    T, B, _ = emb.shape
    x = jnp.tanh(emb.astype(jnp.float32)).astype(jnp.bfloat16)
    L = len(params["rnn"])

    def project(act_bf16, w_bf16, bias_f32):
        n = act_bf16.shape[0] * act_bf16.shape[1]
        out = jnp.dot(act_bf16.reshape(n, -1), w_bf16,
                      preferred_element_type=jnp.float32) + bias_f32[0]
        return out.astype(jnp.bfloat16).reshape(
            act_bf16.shape[0], act_bf16.shape[1], -1)

    wih0, _, b0 = params["rnn"][0]
    p = project(x, wih0, b0)
    h_finals, y = [], None
    for layer in range(L):
        _, whh_t, _ = params["rnn"][layer]

        def step(h, pt, whh_t=whh_t):
            h_new = jnp.tanh(pt.astype(jnp.float32)
                             + jnp.dot(h.astype(jnp.bfloat16), whh_t,
                                       preferred_element_type=jnp.float32))
            return h_new, h_new.astype(jnp.bfloat16)

        h_last, ys = jax.lax.scan(step, h0[layer], p)
        h_finals.append(h_last)
        if layer + 1 < L:
            wih_n, _, b_n = params["rnn"][layer + 1]
            p = project(ys, wih_n, b_n)
        else:
            y = ys
    H = y.shape[-1]
    logits2d = (jnp.dot(jnp.transpose(y, (1, 0, 2)).reshape(B * T, H),
                        params["lin_w_t"], preferred_element_type=jnp.float32)
                + params["lin_b"][0])
    V = logits2d.shape[-1]
    return logits2d.reshape(B, T, V), jnp.stack(h_finals, axis=0)


# --------------------------------- Params ------------------------------------ #

def init_params(key, vocab_size, embedding_dim, hidden_dim, num_layers):
    keys = jax.random.split(key, 1 + 4 * num_layers)
    # Embedding: xavier_uniform_, stored bf16.
    bound = np.sqrt(6.0 / (vocab_size + embedding_dim))
    embedding = jax.random.uniform(keys[0], (vocab_size, embedding_dim),
                                   jnp.float32, -bound, bound).astype(jnp.bfloat16)
    # nn.RNN default init: U(-1/sqrt(H), 1/sqrt(H)) for all weights/biases.
    k = 1.0 / np.sqrt(hidden_dim)
    rnn = []
    for layer in range(num_layers):
        in_dim = embedding_dim if layer == 0 else hidden_dim
        kw = keys[1 + 4 * layer: 1 + 4 * (layer + 1)]
        w_ih = jax.random.uniform(kw[0], (hidden_dim, in_dim), jnp.float32, -k, k)
        w_hh = jax.random.uniform(kw[1], (hidden_dim, hidden_dim), jnp.float32, -k, k)
        b_ih = jax.random.uniform(kw[2], (hidden_dim,), jnp.float32, -k, k)
        b_hh = jax.random.uniform(kw[3], (hidden_dim,), jnp.float32, -k, k)
        # store transposed bf16 weights and a fused f32 bias for the kernels
        rnn.append((w_ih.T.astype(jnp.bfloat16),
                    w_hh.T.astype(jnp.bfloat16),
                    (b_ih + b_hh).reshape(1, hidden_dim)))
    # Linear: zeros (per the module's init_weights); weight stored bf16.
    lin_w_t = jnp.zeros((hidden_dim, vocab_size), jnp.bfloat16)
    lin_b = jnp.zeros((1, vocab_size), jnp.float32)
    return {"embedding": embedding, "rnn": rnn,
            "lin_w_t": lin_w_t, "lin_b": lin_b}


# ----------------------------------- Main ------------------------------------ #

if __name__ == "__main__":
    vocab_size, embedding_dim, hidden_dim, num_layers = 128, 32, 32, 2
    batch, seq = 2, 8

    key = jax.random.PRNGKey(0)
    k_param, k_tok, k_lw, k_lb = jax.random.split(key, 4)
    params = init_params(k_param, vocab_size, embedding_dim, hidden_dim, num_layers)

    # The PyTorch module zero-inits the linear layer; use nonzero values in the
    # self-test so the vocab-projection kernel's matmul path is actually exercised.
    params["lin_w_t"] = (0.1 * jax.random.normal(
        k_lw, (hidden_dim, vocab_size), jnp.float32)).astype(jnp.bfloat16)
    params["lin_b"] = 0.1 * jax.random.normal(k_lb, (1, vocab_size), jnp.float32)

    tokens = jax.random.randint(k_tok, (batch, seq), 0, vocab_size, dtype=jnp.int32)
    h0 = jnp.zeros((num_layers, batch, hidden_dim), jnp.float32)   # initHidden

    fwd = jax.jit(rnn_model_forward)
    logits, h_n = fwd(params, tokens, h0)
    logits = jax.block_until_ready(logits)
    h_n = jax.block_until_ready(h_n)

    ref_logits, ref_h_n = rnn_model_reference(params, tokens, h0)
    # bf16 storage -> loosened tolerances (reference mirrors the same dtype flow).
    np.testing.assert_allclose(np.asarray(logits, np.float32),
                               np.asarray(ref_logits, np.float32),
                               rtol=2e-2, atol=2e-2)
    np.testing.assert_allclose(np.asarray(h_n, np.float32),
                               np.asarray(ref_h_n, np.float32),
                               rtol=2e-2, atol=2e-2)

    assert logits.shape == (batch, seq, vocab_size)
    assert h_n.shape == (num_layers, batch, hidden_dim)
    print("KERNEL_OK")
</pallas_src>

<mosaic_0001>
module attributes {stable_mosaic.version = 11 : i64} {
  func.func @matmul_bias_kernel(%arg0: i32, %arg1: i32, %arg2: memref<16x32xbf16, #tpu.memory_space<vmem>>, %arg3: memref<32x32xbf16, #tpu.memory_space<vmem>>, %arg4: memref<1x32xf32, #tpu.memory_space<vmem>>, %arg5: memref<16x32xbf16, #tpu.memory_space<vmem>>) attributes {dimension_semantics = [#tpu.dimension_semantics<parallel>, #tpu.dimension_semantics<parallel>], iteration_bounds = array<i64: 1, 1>, scalar_prefetch = 0 : i64, scratch_operands = 0 : i64, tpu.core_type = #tpu.core_type<tc>, window_params = [{transform_indices = @transform_0, window_bounds = array<i64: 16, 32>}, {pipeline_mode = #tpu.pipeline_mode<synchronous>, transform_indices = @transform_1, window_bounds = array<i64: 32, 32>}, {pipeline_mode = #tpu.pipeline_mode<synchronous>, transform_indices = @transform_2, window_bounds = array<i64: 1, 32>}, {transform_indices = @transform_3, window_bounds = array<i64: 16, 32>}]} {
    %c0 = arith.constant 0 : index
    %c0_0 = arith.constant 0 : index
    %0 = vector.load %arg2[%c0, %c0_0] : memref<16x32xbf16, #tpu.memory_space<vmem>>, vector<16x32xbf16>
    %1 = arith.extf %0 : vector<16x32xbf16> to vector<16x32xf32>
    %2 = math.tanh %1 : vector<16x32xf32>
    %3 = arith.truncf %2 : vector<16x32xf32> to vector<16x32xbf16>
    %c0_1 = arith.constant 0 : index
    %c0_2 = arith.constant 0 : index
    %4 = vector.load %arg3[%c0_1, %c0_2] : memref<32x32xbf16, #tpu.memory_space<vmem>>, vector<32x32xbf16>
    %cst = arith.constant dense<0.000000e+00> : vector<16x32xf32>
    %5 = tpu.matmul %3, %4, %cst {dimension_numbers = #tpu.dot_dimension_numbers<[1], [0], [0], [1], [0, 0, 1, 1], [], []>} : vector<16x32xbf16>, vector<32x32xbf16>, vector<16x32xf32> -> vector<16x32xf32>
    %c0_3 = arith.constant 0 : index
    %c0_4 = arith.constant 0 : index
    %6 = vector.load %arg4[%c0_3, %c0_4] : memref<1x32xf32, #tpu.memory_space<vmem>>, vector<1x32xf32>
    %7 = vector.broadcast %6 : vector<1x32xf32> to vector<16x32xf32>
    %8 = arith.addf %5, %7 : vector<16x32xf32>
    %9 = arith.truncf %8 : vector<16x32xf32> to vector<16x32xbf16>
    %c0_5 = arith.constant 0 : index
    %c0_6 = arith.constant 0 : index
    %10 = vector.load %arg5[%c0_5, %c0_6] : memref<16x32xbf16, #tpu.memory_space<vmem>>, vector<16x32xbf16>
    tpu.vector_store %arg5[%c0_5, %c0_6], %9 {strides = array<i32>} : memref<16x32xbf16, #tpu.memory_space<vmem>>, vector<16x32xbf16>,
    return
  }
  func.func @transform_0(%arg0: i32, %arg1: i32) -> (i32, i32) {
    %c0_i32 = arith.constant 0 : i32
    %c0_i32_0 = arith.constant 0 : i32
    return %arg0, %c0_i32 : i32, i32
  }
  func.func @transform_1(%arg0: i32, %arg1: i32) -> (i32, i32) {
    %c0_i32 = arith.constant 0 : i32
    %c0_i32_0 = arith.constant 0 : i32
    return %c0_i32, %arg1 : i32, i32
  }
  func.func @transform_2(%arg0: i32, %arg1: i32) -> (i32, i32) {
    %c0_i32 = arith.constant 0 : i32
    %c0_i32_0 = arith.constant 0 : i32
    return %c0_i32, %arg1 : i32, i32
  }
  func.func @transform_3(%arg0: i32, %arg1: i32) -> (i32, i32) {
    %c0_i32 = arith.constant 0 : i32
    return %arg0, %arg1 : i32, i32
  }
}

module attributes {stable_mosaic.version = 11 : i64} {
  func.func @rnn_recurrence_kernel(%arg0: i32, %arg1: i32, %arg2: memref<8x2x32xbf16, #tpu.memory_space<vmem>>, %arg3: memref<2x32xf32, #tpu.memory_space<vmem>>, %arg4: memref<32x32xbf16, #tpu.memory_space<vmem>>, %arg5: memref<32x32xbf16, #tpu.memory_space<vmem>>, %arg6: memref<1x32xf32, #tpu.memory_space<vmem>>, %arg7: memref<8x2x32xbf16, #tpu.memory_space<vmem>>, %arg8: memref<2x32xf32, #tpu.memory_space<vmem>>, %arg9: memref<2x32xf32, #tpu.memory_space<vmem>>) attributes {dimension_semantics = [#tpu.dimension_semantics<parallel>, #tpu.dimension_semantics<arbitrary>], iteration_bounds = array<i64: 1, 1>, scalar_prefetch = 0 : i64, scratch_operands = 1 : i64, tpu.core_type = #tpu.core_type<tc>, window_params = [{transform_indices = @transform_0, window_bounds = array<i64: 8, 2, 32>}, {transform_indices = @transform_1, window_bounds = array<i64: 2, 32>}, {pipeline_mode = #tpu.pipeline_mode<synchronous>, transform_indices = @transform_2, window_bounds = array<i64: 32, 32>}, {pipeline_mode = #tpu.pipeline_mode<synchronous>, transform_indices = @transform_3, window_bounds = array<i64: 32, 32>}, {pipeline_mode = #tpu.pipeline_mode<synchronous>, transform_indices = @transform_4, window_bounds = array<i64: 1, 32>}, {transform_indices = @transform_5, window_bounds = array<i64: 8, 2, 32>}, {transform_indices = @transform_6, window_bounds = array<i64: 2, 32>}]} {
    %c0_i32 = arith.constant 0 : i32
    %0 = arith.cmpi eq, %arg1, %c0_i32 : i32
    %1 = arith.extui %0 : i1 to i32
    %c0_i32_0 = arith.constant 0 : i32
    %2 = arith.cmpi ne, %1, %c0_i32_0 : i32
    scf.if %2 {
      %c0_60 = arith.constant 0 : index
      %c0_61 = arith.constant 0 : index
      %147 = vector.load %arg3[%c0_60, %c0_61] : memref<2x32xf32, #tpu.memory_space<vmem>>, vector<2x32xf32>
      %c0_62 = arith.constant 0 : index
      %c0_63 = arith.constant 0 : index
      %148 = vector.load %arg9[%c0_62, %c0_63] : memref<2x32xf32, #tpu.memory_space<vmem>>, vector<2x32xf32>
      tpu.vector_store %arg9[%c0_62, %c0_63], %147 {strides = array<i32>} : memref<2x32xf32, #tpu.memory_space<vmem>>, vector<2x32xf32>,
    } else {
    }
    %c0 = arith.constant 0 : index
    %c0_1 = arith.constant 0 : index
    %3 = vector.load %arg4[%c0, %c0_1] : memref<32x32xbf16, #tpu.memory_space<vmem>>, vector<32x32xbf16>
    %c0_2 = arith.constant 0 : index
    %c0_3 = arith.constant 0 : index
    %4 = vector.load %arg5[%c0_2, %c0_3] : memref<32x32xbf16, #tpu.memory_space<vmem>>, vector<32x32xbf16>
    %c0_4 = arith.constant 0 : index
    %c0_5 = arith.constant 0 : index
    %5 = vector.load %arg6[%c0_4, %c0_5] : memref<1x32xf32, #tpu.memory_space<vmem>>, vector<1x32xf32>
    %c0_6 = arith.constant 0 : index
    %c0_7 = arith.constant 0 : index
    %6 = vector.load %arg9[%c0_6, %c0_7] : memref<2x32xf32, #tpu.memory_space<vmem>>, vector<2x32xf32>
    %c0_i32_8 = arith.constant 0 : i32
    %7 = arith.truncf %6 : vector<2x32xf32> to vector<2x32xbf16>
    %8 = arith.index_cast %c0_i32_8 : i32 to index
    %c0_9 = arith.constant 0 : index
    %c0_10 = arith.constant 0 : index
    %9 = vector.load %arg2[%8, %c0_9, %c0_10] : memref<8x2x32xbf16, #tpu.memory_space<vmem>>, vector<1x2x32xbf16>
    %10 = vector.shape_cast %9 : vector<1x2x32xbf16> to vector<2x32xbf16>
    %11 = arith.extf %10 : vector<2x32xbf16> to vector<2x32xf32>
    %cst = arith.constant dense<0.000000e+00> : vector<2x32xf32>
    %12 = tpu.matmul %7, %3, %cst {dimension_numbers = #tpu.dot_dimension_numbers<[1], [0], [0], [1], [0, 0, 1, 1], [], []>} : vector<2x32xbf16>, vector<32x32xbf16>, vector<2x32xf32> -> vector<2x32xf32>
    %13 = arith.addf %11, %12 : vector<2x32xf32>
    %14 = math.tanh %13 : vector<2x32xf32>
    %15 = arith.truncf %14 : vector<2x32xf32> to vector<2x32xbf16>
    %cst_11 = arith.constant dense<0.000000e+00> : vector<2x32xf32>
    %16 = tpu.matmul %15, %4, %cst_11 {dimension_numbers = #tpu.dot_dimension_numbers<[1], [0], [0], [1], [0, 0, 1, 1], [], []>} : vector<2x32xbf16>, vector<32x32xbf16>, vector<2x32xf32> -> vector<2x32xf32>
    %17 = vector.broadcast %5 : vector<1x32xf32> to vector<2x32xf32>
    %18 = arith.addf %16, %17 : vector<2x32xf32>
    %19 = arith.truncf %18 : vector<2x32xf32> to vector<2x32xbf16>
    %20 = arith.index_cast %c0_i32_8 : i32 to index
    %c0_12 = arith.constant 0 : index
    %c0_13 = arith.constant 0 : index
    %21 = vector.load %arg7[%20, %c0_12, %c0_13] : memref<8x2x32xbf16, #tpu.memory_space<vmem>>, vector<1x2x32xbf16>
    %22 = vector.shape_cast %21 : vector<1x2x32xbf16> to vector<2x32xbf16>
    %23 = vector.shape_cast %19 : vector<2x32xbf16> to vector<1x2x32xbf16>
    tpu.vector_store %arg7[%20, %c0_12, %c0_13], %23 {strides = array<i32>} : memref<8x2x32xbf16, #tpu.memory_space<vmem>>, vector<1x2x32xbf16>,
    %c1_i32 = arith.constant 1 : i32
    %24 = arith.truncf %14 : vector<2x32xf32> to vector<2x32xbf16>
    %25 = arith.index_cast %c1_i32 : i32 to index
    %c0_14 = arith.constant 0 : index
    %c0_15 = arith.constant 0 : index
    %26 = vector.load %arg2[%25, %c0_14, %c0_15] : memref<8x2x32xbf16, #tpu.memory_space<vmem>>, vector<1x2x32xbf16>
    %27 = vector.shape_cast %26 : vector<1x2x32xbf16> to vector<2x32xbf16>
    %28 = arith.extf %27 : vector<2x32xbf16> to vector<2x32xf32>
    %cst_16 = arith.constant dense<0.000000e+00> : vector<2x32xf32>
    %29 = tpu.matmul %24, %3, %cst_16 {dimension_numbers = #tpu.dot_dimension_numbers<[1], [0], [0], [1], [0, 0, 1, 1], [], []>} : vector<2x32xbf16>, vector<32x32xbf16>, vector<2x32xf32> -> vector<2x32xf32>
    %30 = arith.addf %28, %29 : vector<2x32xf32>
    %31 = math.tanh %30 : vector<2x32xf32>
    %32 = arith.truncf %31 : vector<2x32xf32> to vector<2x32xbf16>
    %cst_17 = arith.constant dense<0.000000e+00> : vector<2x32xf32>
    %33 = tpu.matmul %32, %4, %cst_17 {dimension_numbers = #tpu.dot_dimension_numbers<[1], [0], [0], [1], [0, 0, 1, 1], [], []>} : vector<2x32xbf16>, vector<32x32xbf16>, vector<2x32xf32> -> vector<2x32xf32>
    %34 = vector.broadcast %5 : vector<1x32xf32> to vector<2x32xf32>
    %35 = arith.addf %33, %34 : vector<2x32xf32>
    %36 = arith.truncf %35 : vector<2x32xf32> to vector<2x32xbf16>
    %37 = arith.index_cast %c1_i32 : i32 to index
    %c0_18 = arith.constant 0 : index
    %c0_19 = arith.constant 0 : index
    %38 = vector.load %arg7[%37, %c0_18, %c0_19] : memref<8x2x32xbf16, #tpu.memory_space<vmem>>, vector<1x2x32xbf16>
    %39 = vector.shape_cast %38 : vector<1x2x32xbf16> to vector<2x32xbf16>
    %40 = vector.shape_cast %36 : vector<2x32xbf16> to vector<1x2x32xbf16>
    tpu.vector_store %arg7[%37, %c0_18, %c0_19], %40 {strides = array<i32>} : memref<8x2x32xbf16, #tpu.memory_space<vmem>>, vector<1x2x32xbf16>,
    %c2_i32 = arith.constant 2 : i32
    %41 = arith.truncf %31 : vector<2x32xf32> to vector<2x32xbf16>
    %42 = arith.index_cast %c2_i32 : i32 to index
    %c0_20 = arith.constant 0 : index
    %c0_21 = arith.constant 0 : index
    %43 = vector.load %arg2[%42, %c0_20, %c0_21] : memref<8x2x32xbf16, #tpu.memory_space<vmem>>, vector<1x2x32xbf16>
    %44 = vector.shape_cast %43 : vector<1x2x32xbf16> to vector<2x32xbf16>
    %45 = arith.extf %44 : vector<2x32xbf16> to vector<2x32xf32>
    %cst_22 = arith.constant dense<0.000000e+00> : vector<2x32xf32>
    %46 = tpu.matmul %41, %3, %cst_22 {dimension_numbers = #tpu.dot_dimension_numbers<[1], [0], [0], [1], [0, 0, 1, 1], [], []>} : vector<2x32xbf16>, vector<32x32xbf16>, vector<2x32xf32> -> vector<2x32xf32>
    %47 = arith.addf %45, %46 : vector<2x32xf32>
    %48 = math.tanh %47 : vector<2x32xf32>
    %49 = arith.truncf %48 : vector<2x32xf32> to vector<2x32xbf16>
    %cst_23 = arith.constant dense<0.000000e+00> : vector<2x32xf32>
    %50 = tpu.matmul %49, %4, %cst_23 {dimension_numbers = #tpu.dot_dimension_numbers<[1], [0], [0], [1], [0, 0, 1, 1], [], []>} : vector<2x32xbf16>, vector<32x32xbf16>, vector<2x32xf32> -> vector<2x32xf32>
    %51 = vector.broadcast %5 : vector<1x32xf32> to vector<2x32xf32>
    %52 = arith.addf %50, %51 : vector<2x32xf32>
    %53 = arith.truncf %52 : vector<2x32xf32> to vector<2x32xbf16>
    %54 = arith.index_cast %c2_i32 : i32 to index
    %c0_24 = arith.constant 0 : index
    %c0_25 = arith.constant 0 : index
    %55 = vector.load %arg7[%54, %c0_24, %c0_25] : memref<8x2x32xbf16, #tpu.memory_space<vmem>>, vector<1x2x32xbf16>
    %56 = vector.shape_cast %55 : vector<1x2x32xbf16> to vector<2x32xbf16>
    %57 = vector.shape_cast %53 : vector<2x32xbf16> to vector<1x2x32xbf16>
    tpu.vector_store %arg7[%54, %c0_24, %c0_25], %57 {strides = array<i32>} : memref<8x2x32xbf16, #tpu.memory_space<vmem>>, vector<1x2x32xbf16>,
    %c3_i32 = arith.constant 3 : i32
    %58 = arith.truncf %48 : vector<2x32xf32> to vector<2x32xbf16>
    %59 = arith.index_cast %c3_i32 : i32 to index
    %c0_26 = arith.constant 0 : index
    %c0_27 = arith.constant 0 : index
    %60 = vector.load %arg2[%59, %c0_26, %c0_27] : memref<8x2x32xbf16, #tpu.memory_space<vmem>>, vector<1x2x32xbf16>
    %61 = vector.shape_cast %60 : vector<1x2x32xbf16> to vector<2x32xbf16>
    %62 = arith.extf %61 : vector<2x32xbf16> to vector<2x32xf32>
    %cst_28 = arith.constant dense<0.000000e+00> : vector<2x32xf32>
    %63 = tpu.matmul %58, %3, %cst_28 {dimension_numbers = #tpu.dot_dimension_numbers<[1], [0], [0], [1], [0, 0, 1, 1], [], []>} : vector<2x32xbf16>, vector<32x32xbf16>, vector<2x32xf32> -> vector<2x32xf32>
    %64 = arith.addf %62, %63 : vector<2x32xf32>
    %65 = math.tanh %64 : vector<2x32xf32>
    %66 = arith.truncf %65 : vector<2x32xf32> to vector<2x32xbf16>
    %cst_29 = arith.constant dense<0.000000e+00> : vector<2x32xf32>
    %67 = tpu.matmul %66, %4, %cst_29 {dimension_numbers = #tpu.dot_dimension_numbers<[1], [0], [0], [1], [0, 0, 1, 1], [], []>} : vector<2x32xbf16>, vector<32x32xbf16>, vector<2x32xf32> -> vector<2x32xf32>
    %68 = vector.broadcast %5 : vector<1x32xf32> to vector<2x32xf32>
    %69 = arith.addf %67, %68 : vector<2x32xf32>
    %70 = arith.truncf %69 : vector<2x32xf32> to vector<2x32xbf16>
    %71 = arith.index_cast %c3_i32 : i32 to index
    %c0_30 = arith.constant 0 : index
    %c0_31 = arith.constant 0 : index
    %72 = vector.load %arg7[%71, %c0_30, %c0_31] : memref<8x2x32xbf16, #tpu.memory_space<vmem>>, vector<1x2x32xbf16>
    %73 = vector.shape_cast %72 : vector<1x2x32xbf16> to vector<2x32xbf16>
    %74 = vector.shape_cast %70 : vector<2x32xbf16> to vector<1x2x32xbf16>
    tpu.vector_store %arg7[%71, %c0_30, %c0_31], %74 {strides = array<i32>} : memref<8x2x32xbf16, #tpu.memory_space<vmem>>, vector<1x2x32xbf16>,
    %c4_i32 = arith.constant 4 : i32
    %75 = arith.truncf %65 : vector<2x32xf32> to vector<2x32xbf16>
    %76 = arith.index_cast %c4_i32 : i32 to index
    %c0_32 = arith.constant 0 : index
    %c0_33 = arith.constant 0 : index
    %77 = vector.load %arg2[%76, %c0_32, %c0_33] : memref<8x2x32xbf16, #tpu.memory_space<vmem>>, vector<1x2x32xbf16>
    %78 = vector.shape_cast %77 : vector<1x2x32xbf16> to vector<2x32xbf16>
    %79 = arith.extf %78 : vector<2x32xbf16> to vector<2x32xf32>
    %cst_34 = arith.constant dense<0.000000e+00> : vector<2x32xf32>
    %80 = tpu.matmul %75, %3, %cst_34 {dimension_numbers = #tpu.dot_dimension_numbers<[1], [0], [0], [1], [0, 0, 1, 1], [], []>} : vector<2x32xbf16>, vector<32x32xbf16>, vector<2x32xf32> -> vector<2x32xf32>
    %81 = arith.addf %79, %80 : vector<2x32xf32>
    %82 = math.tanh %81 : vector<2x32xf32>
    %83 = arith.truncf %82 : vector<2x32xf32> to vector<2x32xbf16>
    %cst_35 = arith.constant dense<0.000000e+00> : vector<2x32xf32>
    %84 = tpu.matmul %83, %4, %cst_35 {dimension_numbers = #tpu.dot_dimension_numbers<[1], [0], [0], [1], [0, 0, 1, 1], [], []>} : vector<2x32xbf16>, vector<32x32xbf16>, vector<2x32xf32> -> vector<2x32xf32>
    %85 = vector.broadcast %5 : vector<1x32xf32> to vector<2x32xf32>
    %86 = arith.addf %84, %85 : vector<2x32xf32>
    %87 = arith.truncf %86 : vector<2x32xf32> to vector<2x32xbf16>
    %88 = arith.index_cast %c4_i32 : i32 to index
    %c0_36 = arith.constant 0 : index
    %c0_37 = arith.constant 0 : index
    %89 = vector.load %arg7[%88, %c0_36, %c0_37] : memref<8x2x32xbf16, #tpu.memory_space<vmem>>, vector<1x2x32xbf16>
    %90 = vector.shape_cast %89 : vector<1x2x32xbf16> to vector<2x32xbf16>
    %91 = vector.shape_cast %87 : vector<2x32xbf16> to vector<1x2x32xbf16>
    tpu.vector_store %arg7[%88, %c0_36, %c0_37], %91 {strides = array<i32>} : memref<8x2x32xbf16, #tpu.memory_space<vmem>>, vector<1x2x32xbf16>,
    %c5_i32 = arith.constant 5 : i32
    %92 = arith.truncf %82 : vector<2x32xf32> to vector<2x32xbf16>
    %93 = arith.index_cast %c5_i32 : i32 to index
    %c0_38 = arith.constant 0 : index
    %c0_39 = arith.constant 0 : index
    %94 = vector.load %arg2[%93, %c0_38, %c0_39] : memref<8x2x32xbf16, #tpu.memory_space<vmem>>, vector<1x2x32xbf16>
    %95 = vector.shape_cast %94 : vector<1x2x32xbf16> to vector<2x32xbf16>
    %96 = arith.extf %95 : vector<2x32xbf16> to vector<2x32xf32>
    %cst_40 = arith.constant dense<0.000000e+00> : vector<2x32xf32>
    %97 = tpu.matmul %92, %3, %cst_40 {dimension_numbers = #tpu.dot_dimension_numbers<[1], [0], [0], [1], [0, 0, 1, 1], [], []>} : vector<2x32xbf16>, vector<32x32xbf16>, vector<2x32xf32> -> vector<2x32xf32>
    %98 = arith.addf %96, %97 : vector<2x32xf32>
    %99 = math.tanh %98 : vector<2x32xf32>
    %100 = arith.truncf %99 : vector<2x32xf32> to vector<2x32xbf16>
    %cst_41 = arith.constant dense<0.000000e+00> : vector<2x32xf32>
    %101 = tpu.matmul %100, %4, %cst_41 {dimension_numbers = #tpu.dot_dimension_numbers<[1], [0], [0], [1], [0, 0, 1, 1], [], []>} : vector<2x32xbf16>, vector<32x32xbf16>, vector<2x32xf32> -> vector<2x32xf32>
    %102 = vector.broadcast %5 : vector<1x32xf32> to vector<2x32xf32>
    %103 = arith.addf %101, %102 : vector<2x32xf32>
    %104 = arith.truncf %103 : vector<2x32xf32> to vector<2x32xbf16>
    %105 = arith.index_cast %c5_i32 : i32 to index
    %c0_42 = arith.constant 0 : index
    %c0_43 = arith.constant 0 : index
    %106 = vector.load %arg7[%105, %c0_42, %c0_43] : memref<8x2x32xbf16, #tpu.memory_space<vmem>>, vector<1x2x32xbf16>
    %107 = vector.shape_cast %106 : vector<1x2x32xbf16> to vector<2x32xbf16>
    %108 = vector.shape_cast %104 : vector<2x32xbf16> to vector<1x2x32xbf16>
    tpu.vector_store %arg7[%105, %c0_42, %c0_43], %108 {strides = array<i32>} : memref<8x2x32xbf16, #tpu.memory_space<vmem>>, vector<1x2x32xbf16>,
    %c6_i32 = arith.constant 6 : i32
    %109 = arith.truncf %99 : vector<2x32xf32> to vector<2x32xbf16>
    %110 = arith.index_cast %c6_i32 : i32 to index
    %c0_44 = arith.constant 0 : index
    %c0_45 = arith.constant 0 : index
    %111 = vector.load %arg2[%110, %c0_44, %c0_45] : memref<8x2x32xbf16, #tpu.memory_space<vmem>>, vector<1x2x32xbf16>
    %112 = vector.shape_cast %111 : vector<1x2x32xbf16> to vector<2x32xbf16>
    %113 = arith.extf %112 : vector<2x32xbf16> to vector<2x32xf32>
    %cst_46 = arith.constant dense<0.000000e+00> : vector<2x32xf32>
    %114 = tpu.matmul %109, %3, %cst_46 {dimension_numbers = #tpu.dot_dimension_numbers<[1], [0], [0], [1], [0, 0, 1, 1], [], []>} : vector<2x32xbf16>, vector<32x32xbf16>, vector<2x32xf32> -> vector<2x32xf32>
    %115 = arith.addf %113, %114 : vector<2x32xf32>
    %116 = math.tanh %115 : vector<2x32xf32>
    %117 = arith.truncf %116 : vector<2x32xf32> to vector<2x32xbf16>
    %cst_47 = arith.constant dense<0.000000e+00> : vector<2x32xf32>
    %118 = tpu.matmul %117, %4, %cst_47 {dimension_numbers = #tpu.dot_dimension_numbers<[1], [0], [0], [1], [0, 0, 1, 1], [], []>} : vector<2x32xbf16>, vector<32x32xbf16>, vector<2x32xf32> -> vector<2x32xf32>
    %119 = vector.broadcast %5 : vector<1x32xf32> to vector<2x32xf32>
    %120 = arith.addf %118, %119 : vector<2x32xf32>
    %121 = arith.truncf %120 : vector<2x32xf32> to vector<2x32xbf16>
    %122 = arith.index_cast %c6_i32 : i32 to index
    %c0_48 = arith.constant 0 : index
    %c0_49 = arith.constant 0 : index
    %123 = vector.load %arg7[%122, %c0_48, %c0_49] : memref<8x2x32xbf16, #tpu.memory_space<vmem>>, vector<1x2x32xbf16>
    %124 = vector.shape_cast %123 : vector<1x2x32xbf16> to vector<2x32xbf16>
    %125 = vector.shape_cast %121 : vector<2x32xbf16> to vector<1x2x32xbf16>
    tpu.vector_store %arg7[%122, %c0_48, %c0_49], %125 {strides = array<i32>} : memref<8x2x32xbf16, #tpu.memory_space<vmem>>, vector<1x2x32xbf16>,
    %c7_i32 = arith.constant 7 : i32
    %126 = arith.truncf %116 : vector<2x32xf32> to vector<2x32xbf16>
    %127 = arith.index_cast %c7_i32 : i32 to index
    %c0_50 = arith.constant 0 : index
    %c0_51 = arith.constant 0 : index
    %128 = vector.load %arg2[%127, %c0_50, %c0_51] : memref<8x2x32xbf16, #tpu.memory_space<vmem>>, vector<1x2x32xbf16>
    %129 = vector.shape_cast %128 : vector<1x2x32xbf16> to vector<2x32xbf16>
    %130 = arith.extf %129 : vector<2x32xbf16> to vector<2x32xf32>
    %cst_52 = arith.constant dense<0.000000e+00> : vector<2x32xf32>
    %131 = tpu.matmul %126, %3, %cst_52 {dimension_numbers = #tpu.dot_dimension_numbers<[1], [0], [0], [1], [0, 0, 1, 1], [], []>} : vector<2x32xbf16>, vector<32x32xbf16>, vector<2x32xf32> -> vector<2x32xf32>
    %132 = arith.addf %130, %131 : vector<2x32xf32>
    %133 = math.tanh %132 : vector<2x32xf32>
    %134 = arith.truncf %133 : vector<2x32xf32> to vector<2x32xbf16>
    %cst_53 = arith.constant dense<0.000000e+00> : vector<2x32xf32>
    %135 = tpu.matmul %134, %4, %cst_53 {dimension_numbers = #tpu.dot_dimension_numbers<[1], [0], [0], [1], [0, 0, 1, 1], [], []>} : vector<2x32xbf16>, vector<32x32xbf16>, vector<2x32xf32> -> vector<2x32xf32>
    %136 = vector.broadcast %5 : vector<1x32xf32> to vector<2x32xf32>
    %137 = arith.addf %135, %136 : vector<2x32xf32>
    %138 = arith.truncf %137 : vector<2x32xf32> to vector<2x32xbf16>
    %139 = arith.index_cast %c7_i32 : i32 to index
    %c0_54 = arith.constant 0 : index
    %c0_55 = arith.constant 0 : index
    %140 = vector.load %arg7[%139, %c0_54, %c0_55] : memref<8x2x32xbf16, #tpu.memory_space<vmem>>, vector<1x2x32xbf16>
    %141 = vector.shape_cast %140 : vector<1x2x32xbf16> to vector<2x32xbf16>
    %142 = vector.shape_cast %138 : vector<2x32xbf16> to vector<1x2x32xbf16>
    tpu.vector_store %arg7[%139, %c0_54, %c0_55], %142 {strides = array<i32>} : memref<8x2x32xbf16, #tpu.memory_space<vmem>>, vector<1x2x32xbf16>,
    %c8_i32 = arith.constant 8 : i32
    %c0_56 = arith.constant 0 : index
    %c0_57 = arith.constant 0 : index
    %143 = vector.load %arg9[%c0_56, %c0_57] : memref<2x32xf32, #tpu.memory_space<vmem>>, vector<2x32xf32>
    tpu.vector_store %arg9[%c0_56, %c0_57], %133 {strides = array<i32>} : memref<2x32xf32, #tpu.memory_space<vmem>>, vector<2x32xf32>,
    %c0_i32_58 = arith.constant 0 : i32
    %144 = arith.cmpi eq, %arg1, %c0_i32_58 : i32
    %145 = arith.extui %144 : i1 to i32
    %c0_i32_59 = arith.constant 0 : i32
    %146 = arith.cmpi ne, %145, %c0_i32_59 : i32
    scf.if %146 {
      %c0_60 = arith.constant 0 : index
      %c0_61 = arith.constant 0 : index
      %147 = vector.load %arg8[%c0_60, %c0_61] : memref<2x32xf32, #tpu.memory_space<vmem>>, vector<2x32xf32>
      tpu.vector_store %arg8[%c0_60, %c0_61], %133 {strides = array<i32>} : memref<2x32xf32, #tpu.memory_space<vmem>>, vector<2x32xf32>,
    } else {
    }
    return
  }
  func.func @transform_0(%arg0: i32, %arg1: i32) -> (i32, i32, i32) {
    %c0_i32 = arith.constant 0 : i32
    %c0_i32_0 = arith.constant 0 : i32
    return %arg1, %arg0, %c0_i32 : i32, i32, i32
  }
  func.func @transform_1(%arg0: i32, %arg1: i32) -> (i32, i32) {
    %c0_i32 = arith.constant 0 : i32
    %c0_i32_0 = arith.constant 0 : i32
    return %arg0, %c0_i32 : i32, i32
  }
  func.func @transform_2(%arg0: i32, %arg1: i32) -> (i32, i32) {
    %c0_i32 = arith.constant 0 : i32
    %c0_i32_0 = arith.constant 0 : i32
    %c0_i32_1 = arith.constant 0 : i32
    return %c0_i32, %c0_i32_0 : i32, i32
  }
  func.func @transform_3(%arg0: i32, %arg1: i32) -> (i32, i32) {
    %c0_i32 = arith.constant 0 : i32
    %c0_i32_0 = arith.constant 0 : i32
    %c0_i32_1 = arith.constant 0 : i32
    return %c0_i32, %c0_i32_0 : i32, i32
  }
  func.func @transform_4(%arg0: i32, %arg1: i32) -> (i32, i32) {
    %c0_i32 = arith.constant 0 : i32
    %c0_i32_0 = arith.constant 0 : i32
    %c0_i32_1 = arith.constant 0 : i32
    return %c0_i32, %c0_i32_0 : i32, i32
  }
  func.func @transform_5(%arg0: i32, %arg1: i32) -> (i32, i32, i32) {
    %c0_i32 = arith.constant 0 : i32
    %c0_i32_0 = arith.constant 0 : i32
    return %arg1, %arg0, %c0_i32 : i32, i32, i32
  }
  func.func @transform_6(%arg0: i32, %arg1: i32) -> (i32, i32) {
    %c0_i32 = arith.constant 0 : i32
    %c0_i32_0 = arith.constant 0 : i32
    return %arg0, %c0_i32 : i32, i32
  }
}

module attributes {stable_mosaic.version = 11 : i64} {
  func.func @rnn_recurrence_kernel(%arg0: i32, %arg1: i32, %arg2: memref<8x2x32xbf16, #tpu.memory_space<vmem>>, %arg3: memref<2x32xf32, #tpu.memory_space<vmem>>, %arg4: memref<32x32xbf16, #tpu.memory_space<vmem>>, %arg5: memref<8x2x32xbf16, #tpu.memory_space<vmem>>, %arg6: memref<2x32xf32, #tpu.memory_space<vmem>>, %arg7: memref<2x32xf32, #tpu.memory_space<vmem>>) attributes {dimension_semantics = [#tpu.dimension_semantics<parallel>, #tpu.dimension_semantics<arbitrary>], iteration_bounds = array<i64: 1, 1>, scalar_prefetch = 0 : i64, scratch_operands = 1 : i64, tpu.core_type = #tpu.core_type<tc>, window_params = [{transform_indices = @transform_0, window_bounds = array<i64: 8, 2, 32>}, {transform_indices = @transform_1, window_bounds = array<i64: 2, 32>}, {pipeline_mode = #tpu.pipeline_mode<synchronous>, transform_indices = @transform_2, window_bounds = array<i64: 32, 32>}, {transform_indices = @transform_3, window_bounds = array<i64: 8, 2, 32>}, {transform_indices = @transform_4, window_bounds = array<i64: 2, 32>}]} {
    %c0_i32 = arith.constant 0 : i32
    %0 = arith.cmpi eq, %arg1, %c0_i32 : i32
    %1 = arith.extui %0 : i1 to i32
    %c0_i32_0 = arith.constant 0 : i32
    %2 = arith.cmpi ne, %1, %c0_i32_0 : i32
    scf.if %2 {
      %c0_48 = arith.constant 0 : index
      %c0_49 = arith.constant 0 : index
      %113 = vector.load %arg3[%c0_48, %c0_49] : memref<2x32xf32, #tpu.memory_space<vmem>>, vector<2x32xf32>
      %c0_50 = arith.constant 0 : index
      %c0_51 = arith.constant 0 : index
      %114 = vector.load %arg7[%c0_50, %c0_51] : memref<2x32xf32, #tpu.memory_space<vmem>>, vector<2x32xf32>
      tpu.vector_store %arg7[%c0_50, %c0_51], %113 {strides = array<i32>} : memref<2x32xf32, #tpu.memory_space<vmem>>, vector<2x32xf32>,
    } else {
    }
    %c0 = arith.constant 0 : index
    %c0_1 = arith.constant 0 : index
    %3 = vector.load %arg4[%c0, %c0_1] : memref<32x32xbf16, #tpu.memory_space<vmem>>, vector<32x32xbf16>
    %c0_2 = arith.constant 0 : index
    %c0_3 = arith.constant 0 : index
    %4 = vector.load %arg7[%c0_2, %c0_3] : memref<2x32xf32, #tpu.memory_space<vmem>>, vector<2x32xf32>
    %c0_i32_4 = arith.constant 0 : i32
    %5 = arith.truncf %4 : vector<2x32xf32> to vector<2x32xbf16>
    %6 = arith.index_cast %c0_i32_4 : i32 to index
    %c0_5 = arith.constant 0 : index
    %c0_6 = arith.constant 0 : index
    %7 = vector.load %arg2[%6, %c0_5, %c0_6] : memref<8x2x32xbf16, #tpu.memory_space<vmem>>, vector<1x2x32xbf16>
    %8 = vector.shape_cast %7 : vector<1x2x32xbf16> to vector<2x32xbf16>
    %9 = arith.extf %8 : vector<2x32xbf16> to vector<2x32xf32>
    %cst = arith.constant dense<0.000000e+00> : vector<2x32xf32>
    %10 = tpu.matmul %5, %3, %cst {dimension_numbers = #tpu.dot_dimension_numbers<[1], [0], [0], [1], [0, 0, 1, 1], [], []>} : vector<2x32xbf16>, vector<32x32xbf16>, vector<2x32xf32> -> vector<2x32xf32>
    %11 = arith.addf %9, %10 : vector<2x32xf32>
    %12 = math.tanh %11 : vector<2x32xf32>
    %13 = arith.truncf %12 : vector<2x32xf32> to vector<2x32xbf16>
    %14 = arith.index_cast %c0_i32_4 : i32 to index
    %c0_7 = arith.constant 0 : index
    %c0_8 = arith.constant 0 : index
    %15 = vector.load %arg5[%14, %c0_7, %c0_8] : memref<8x2x32xbf16, #tpu.memory_space<vmem>>, vector<1x2x32xbf16>
    %16 = vector.shape_cast %15 : vector<1x2x32xbf16> to vector<2x32xbf16>
    %17 = vector.shape_cast %13 : vector<2x32xbf16> to vector<1x2x32xbf16>
    tpu.vector_store %arg5[%14, %c0_7, %c0_8], %17 {strides = array<i32>} : memref<8x2x32xbf16, #tpu.memory_space<vmem>>, vector<1x2x32xbf16>,
    %c1_i32 = arith.constant 1 : i32
    %18 = arith.truncf %12 : vector<2x32xf32> to vector<2x32xbf16>
    %19 = arith.index_cast %c1_i32 : i32 to index
    %c0_9 = arith.constant 0 : index
    %c0_10 = arith.constant 0 : index
    %20 = vector.load %arg2[%19, %c0_9, %c0_10] : memref<8x2x32xbf16, #tpu.memory_space<vmem>>, vector<1x2x32xbf16>
    %21 = vector.shape_cast %20 : vector<1x2x32xbf16> to vector<2x32xbf16>
    %22 = arith.extf %21 : vector<2x32xbf16> to vector<2x32xf32>
    %cst_11 = arith.constant dense<0.000000e+00> : vector<2x32xf32>
    %23 = tpu.matmul %18, %3, %cst_11 {dimension_numbers = #tpu.dot_dimension_numbers<[1], [0], [0], [1], [0, 0, 1, 1], [], []>} : vector<2x32xbf16>, vector<32x32xbf16>, vector<2x32xf32> -> vector<2x32xf32>
    %24 = arith.addf %22, %23 : vector<2x32xf32>
    %25 = math.tanh %24 : vector<2x32xf32>
    %26 = arith.truncf %25 : vector<2x32xf32> to vector<2x32xbf16>
    %27 = arith.index_cast %c1_i32 : i32 to index
    %c0_12 = arith.constant 0 : index
    %c0_13 = arith.constant 0 : index
    %28 = vector.load %arg5[%27, %c0_12, %c0_13] : memref<8x2x32xbf16, #tpu.memory_space<vmem>>, vector<1x2x32xbf16>
    %29 = vector.shape_cast %28 : vector<1x2x32xbf16> to vector<2x32xbf16>
    %30 = vector.shape_cast %26 : vector<2x32xbf16> to vector<1x2x32xbf16>
    tpu.vector_store %arg5[%27, %c0_12, %c0_13], %30 {strides = array<i32>} : memref<8x2x32xbf16, #tpu.memory_space<vmem>>, vector<1x2x32xbf16>,
    %c2_i32 = arith.constant 2 : i32
    %31 = arith.truncf %25 : vector<2x32xf32> to vector<2x32xbf16>
    %32 = arith.index_cast %c2_i32 : i32 to index
    %c0_14 = arith.constant 0 : index
    %c0_15 = arith.constant 0 : index
    %33 = vector.load %arg2[%32, %c0_14, %c0_15] : memref<8x2x32xbf16, #tpu.memory_space<vmem>>, vector<1x2x32xbf16>
    %34 = vector.shape_cast %33 : vector<1x2x32xbf16> to vector<2x32xbf16>
    %35 = arith.extf %34 : vector<2x32xbf16> to vector<2x32xf32>
    %cst_16 = arith.constant dense<0.000000e+00> : vector<2x32xf32>
    %36 = tpu.matmul %31, %3, %cst_16 {dimension_numbers = #tpu.dot_dimension_numbers<[1], [0], [0], [1], [0, 0, 1, 1], [], []>} : vector<2x32xbf16>, vector<32x32xbf16>, vector<2x32xf32> -> vector<2x32xf32>
    %37 = arith.addf %35, %36 : vector<2x32xf32>
    %38 = math.tanh %37 : vector<2x32xf32>
    %39 = arith.truncf %38 : vector<2x32xf32> to vector<2x32xbf16>
    %40 = arith.index_cast %c2_i32 : i32 to index
    %c0_17 = arith.constant 0 : index
    %c0_18 = arith.constant 0 : index
    %41 = vector.load %arg5[%40, %c0_17, %c0_18] : memref<8x2x32xbf16, #tpu.memory_space<vmem>>, vector<1x2x32xbf16>
    %42 = vector.shape_cast %41 : vector<1x2x32xbf16> to vector<2x32xbf16>
    %43 = vector.shape_cast %39 : vector<2x32xbf16> to vector<1x2x32xbf16>
    tpu.vector_store %arg5[%40, %c0_17, %c0_18], %43 {strides = array<i32>} : memref<8x2x32xbf16, #tpu.memory_space<vmem>>, vector<1x2x32xbf16>,
    %c3_i32 = arith.constant 3 : i32
    %44 = arith.truncf %38 : vector<2x32xf32> to vector<2x32xbf16>
    %45 = arith.index_cast %c3_i32 : i32 to index
    %c0_19 = arith.constant 0 : index
    %c0_20 = arith.constant 0 : index
    %46 = vector.load %arg2[%45, %c0_19, %c0_20] : memref<8x2x32xbf16, #tpu.memory_space<vmem>>, vector<1x2x32xbf16>
    %47 = vector.shape_cast %46 : vector<1x2x32xbf16> to vector<2x32xbf16>
    %48 = arith.extf %47 : vector<2x32xbf16> to vector<2x32xf32>
    %cst_21 = arith.constant dense<0.000000e+00> : vector<2x32xf32>
    %49 = tpu.matmul %44, %3, %cst_21 {dimension_numbers = #tpu.dot_dimension_numbers<[1], [0], [0], [1], [0, 0, 1, 1], [], []>} : vector<2x32xbf16>, vector<32x32xbf16>, vector<2x32xf32> -> vector<2x32xf32>
    %50 = arith.addf %48, %49 : vector<2x32xf32>
    %51 = math.tanh %50 : vector<2x32xf32>
    %52 = arith.truncf %51 : vector<2x32xf32> to vector<2x32xbf16>
    %53 = arith.index_cast %c3_i32 : i32 to index
    %c0_22 = arith.constant 0 : index
    %c0_23 = arith.constant 0 : index
    %54 = vector.load %arg5[%53, %c0_22, %c0_23] : memref<8x2x32xbf16, #tpu.memory_space<vmem>>, vector<1x2x32xbf16>
    %55 = vector.shape_cast %54 : vector<1x2x32xbf16> to vector<2x32xbf16>
    %56 = vector.shape_cast %52 : vector<2x32xbf16> to vector<1x2x32xbf16>
    tpu.vector_store %arg5[%53, %c0_22, %c0_23], %56 {strides = array<i32>} : memref<8x2x32xbf16, #tpu.memory_space<vmem>>, vector<1x2x32xbf16>,
    %c4_i32 = arith.constant 4 : i32
    %57 = arith.truncf %51 : vector<2x32xf32> to vector<2x32xbf16>
    %58 = arith.index_cast %c4_i32 : i32 to index
    %c0_24 = arith.constant 0 : index
    %c0_25 = arith.constant 0 : index
    %59 = vector.load %arg2[%58, %c0_24, %c0_25] : memref<8x2x32xbf16, #tpu.memory_space<vmem>>, vector<1x2x32xbf16>
    %60 = vector.shape_cast %59 : vector<1x2x32xbf16> to vector<2x32xbf16>
    %61 = arith.extf %60 : vector<2x32xbf16> to vector<2x32xf32>
    %cst_26 = arith.constant dense<0.000000e+00> : vector<2x32xf32>
    %62 = tpu.matmul %57, %3, %cst_26 {dimension_numbers = #tpu.dot_dimension_numbers<[1], [0], [0], [1], [0, 0, 1, 1], [], []>} : vector<2x32xbf16>, vector<32x32xbf16>, vector<2x32xf32> -> vector<2x32xf32>
    %63 = arith.addf %61, %62 : vector<2x32xf32>
    %64 = math.tanh %63 : vector<2x32xf32>
    %65 = arith.truncf %64 : vector<2x32xf32> to vector<2x32xbf16>
    %66 = arith.index_cast %c4_i32 : i32 to index
    %c0_27 = arith.constant 0 : index
    %c0_28 = arith.constant 0 : index
    %67 = vector.load %arg5[%66, %c0_27, %c0_28] : memref<8x2x32xbf16, #tpu.memory_space<vmem>>, vector<1x2x32xbf16>
    %68 = vector.shape_cast %67 : vector<1x2x32xbf16> to vector<2x32xbf16>
    %69 = vector.shape_cast %65 : vector<2x32xbf16> to vector<1x2x32xbf16>
    tpu.vector_store %arg5[%66, %c0_27, %c0_28], %69 {strides = array<i32>} : memref<8x2x32xbf16, #tpu.memory_space<vmem>>, vector<1x2x32xbf16>,
    %c5_i32 = arith.constant 5 : i32
    %70 = arith.truncf %64 : vector<2x32xf32> to vector<2x32xbf16>
    %71 = arith.index_cast %c5_i32 : i32 to index
    %c0_29 = arith.constant 0 : index
    %c0_30 = arith.constant 0 : index
    %72 = vector.load %arg2[%71, %c0_29, %c0_30] : memref<8x2x32xbf16, #tpu.memory_space<vmem>>, vector<1x2x32xbf16>
    %73 = vector.shape_cast %72 : vector<1x2x32xbf16> to vector<2x32xbf16>
    %74 = arith.extf %73 : vector<2x32xbf16> to vector<2x32xf32>
    %cst_31 = arith.constant dense<0.000000e+00> : vector<2x32xf32>
    %75 = tpu.matmul %70, %3, %cst_31 {dimension_numbers = #tpu.dot_dimension_numbers<[1], [0], [0], [1], [0, 0, 1, 1], [], []>} : vector<2x32xbf16>, vector<32x32xbf16>, vector<2x32xf32> -> vector<2x32xf32>
    %76 = arith.addf %74, %75 : vector<2x32xf32>
    %77 = math.tanh %76 : vector<2x32xf32>
    %78 = arith.truncf %77 : vector<2x32xf32> to vector<2x32xbf16>
    %79 = arith.index_cast %c5_i32 : i32 to index
    %c0_32 = arith.constant 0 : index
    %c0_33 = arith.constant 0 : index
    %80 = vector.load %arg5[%79, %c0_32, %c0_33] : memref<8x2x32xbf16, #tpu.memory_space<vmem>>, vector<1x2x32xbf16>
    %81 = vector.shape_cast %80 : vector<1x2x32xbf16> to vector<2x32xbf16>
    %82 = vector.shape_cast %78 : vector<2x32xbf16> to vector<1x2x32xbf16>
    tpu.vector_store %arg5[%79, %c0_32, %c0_33], %82 {strides = array<i32>} : memref<8x2x32xbf16, #tpu.memory_space<vmem>>, vector<1x2x32xbf16>,
    %c6_i32 = arith.constant 6 : i32
    %83 = arith.truncf %77 : vector<2x32xf32> to vector<2x32xbf16>
    %84 = arith.index_cast %c6_i32 : i32 to index
    %c0_34 = arith.constant 0 : index
    %c0_35 = arith.constant 0 : index
    %85 = vector.load %arg2[%84, %c0_34, %c0_35] : memref<8x2x32xbf16, #tpu.memory_space<vmem>>, vector<1x2x32xbf16>
    %86 = vector.shape_cast %85 : vector<1x2x32xbf16> to vector<2x32xbf16>
    %87 = arith.extf %86 : vector<2x32xbf16> to vector<2x32xf32>
    %cst_36 = arith.constant dense<0.000000e+00> : vector<2x32xf32>
    %88 = tpu.matmul %83, %3, %cst_36 {dimension_numbers = #tpu.dot_dimension_numbers<[1], [0], [0], [1], [0, 0, 1, 1], [], []>} : vector<2x32xbf16>, vector<32x32xbf16>, vector<2x32xf32> -> vector<2x32xf32>
    %89 = arith.addf %87, %88 : vector<2x32xf32>
    %90 = math.tanh %89 : vector<2x32xf32>
    %91 = arith.truncf %90 : vector<2x32xf32> to vector<2x32xbf16>
    %92 = arith.index_cast %c6_i32 : i32 to index
    %c0_37 = arith.constant 0 : index
    %c0_38 = arith.constant 0 : index
    %93 = vector.load %arg5[%92, %c0_37, %c0_38] : memref<8x2x32xbf16, #tpu.memory_space<vmem>>, vector<1x2x32xbf16>
    %94 = vector.shape_cast %93 : vector<1x2x32xbf16> to vector<2x32xbf16>
    %95 = vector.shape_cast %91 : vector<2x32xbf16> to vector<1x2x32xbf16>
    tpu.vector_store %arg5[%92, %c0_37, %c0_38], %95 {strides = array<i32>} : memref<8x2x32xbf16, #tpu.memory_space<vmem>>, vector<1x2x32xbf16>,
    %c7_i32 = arith.constant 7 : i32
    %96 = arith.truncf %90 : vector<2x32xf32> to vector<2x32xbf16>
    %97 = arith.index_cast %c7_i32 : i32 to index
    %c0_39 = arith.constant 0 : index
    %c0_40 = arith.constant 0 : index
    %98 = vector.load %arg2[%97, %c0_39, %c0_40] : memref<8x2x32xbf16, #tpu.memory_space<vmem>>, vector<1x2x32xbf16>
    %99 = vector.shape_cast %98 : vector<1x2x32xbf16> to vector<2x32xbf16>
    %100 = arith.extf %99 : vector<2x32xbf16> to vector<2x32xf32>
    %cst_41 = arith.constant dense<0.000000e+00> : vector<2x32xf32>
    %101 = tpu.matmul %96, %3, %cst_41 {dimension_numbers = #tpu.dot_dimension_numbers<[1], [0], [0], [1], [0, 0, 1, 1], [], []>} : vector<2x32xbf16>, vector<32x32xbf16>, vector<2x32xf32> -> vector<2x32xf32>
    %102 = arith.addf %100, %101 : vector<2x32xf32>
    %103 = math.tanh %102 : vector<2x32xf32>
    %104 = arith.truncf %103 : vector<2x32xf32> to vector<2x32xbf16>
    %105 = arith.index_cast %c7_i32 : i32 to index
    %c0_42 = arith.constant 0 : index
    %c0_43 = arith.constant 0 : index
    %106 = vector.load %arg5[%105, %c0_42, %c0_43] : memref<8x2x32xbf16, #tpu.memory_space<vmem>>, vector<1x2x32xbf16>
    %107 = vector.shape_cast %106 : vector<1x2x32xbf16> to vector<2x32xbf16>
    %108 = vector.shape_cast %104 : vector<2x32xbf16> to vector<1x2x32xbf16>
    tpu.vector_store %arg5[%105, %c0_42, %c0_43], %108 {strides = array<i32>} : memref<8x2x32xbf16, #tpu.memory_space<vmem>>, vector<1x2x32xbf16>,
    %c8_i32 = arith.constant 8 : i32
    %c0_44 = arith.constant 0 : index
    %c0_45 = arith.constant 0 : index
    %109 = vector.load %arg7[%c0_44, %c0_45] : memref<2x32xf32, #tpu.memory_space<vmem>>, vector<2x32xf32>
    tpu.vector_store %arg7[%c0_44, %c0_45], %103 {strides = array<i32>} : memref<2x32xf32, #tpu.memory_space<vmem>>, vector<2x32xf32>,
    %c0_i32_46 = arith.constant 0 : i32
    %110 = arith.cmpi eq, %arg1, %c0_i32_46 : i32
    %111 = arith.extui %110 : i1 to i32
    %c0_i32_47 = arith.constant 0 : i32
    %112 = arith.cmpi ne, %111, %c0_i32_47 : i32
    scf.if %112 {
      %c0_48 = arith.constant 0 : index
      %c0_49 = arith.constant 0 : index
      %113 = vector.load %arg6[%c0_48, %c0_49] : memref<2x32xf32, #tpu.memory_space<vmem>>, vector<2x32xf32>
      tpu.vector_store %arg6[%c0_48, %c0_49], %103 {strides = array<i32>} : memref<2x32xf32, #tpu.memory_space<vmem>>, vector<2x32xf32>,
    } else {
    }
    return
  }
  func.func @transform_0(%arg0: i32, %arg1: i32) -> (i32, i32, i32) {
    %c0_i32 = arith.constant 0 : i32
    %c0_i32_0 = arith.constant 0 : i32
    return %arg1, %arg0, %c0_i32 : i32, i32, i32
  }
  func.func @transform_1(%arg0: i32, %arg1: i32) -> (i32, i32) {
    %c0_i32 = arith.constant 0 : i32
    %c0_i32_0 = arith.constant 0 : i32
    return %arg0, %c0_i32 : i32, i32
  }
  func.func @transform_2(%arg0: i32, %arg1: i32) -> (i32, i32) {
    %c0_i32 = arith.constant 0 : i32
    %c0_i32_0 = arith.constant 0 : i32
    %c0_i32_1 = arith.constant 0 : i32
    return %c0_i32, %c0_i32_0 : i32, i32
  }
  func.func @transform_3(%arg0: i32, %arg1: i32) -> (i32, i32, i32) {
    %c0_i32 = arith.constant 0 : i32
    %c0_i32_0 = arith.constant 0 : i32
    return %arg1, %arg0, %c0_i32 : i32, i32, i32
  }
  func.func @transform_4(%arg0: i32, %arg1: i32) -> (i32, i32) {
    %c0_i32 = arith.constant 0 : i32
    %c0_i32_0 = arith.constant 0 : i32
    return %arg0, %c0_i32 : i32, i32
  }
}

module attributes {stable_mosaic.version = 11 : i64} {
  func.func @matmul_bias_kernel(%arg0: i32, %arg1: i32, %arg2: memref<16x32xbf16, #tpu.memory_space<vmem>>, %arg3: memref<32x128xbf16, #tpu.memory_space<vmem>>, %arg4: memref<1x128xf32, #tpu.memory_space<vmem>>, %arg5: memref<16x128xf32, #tpu.memory_space<vmem>>) attributes {dimension_semantics = [#tpu.dimension_semantics<parallel>, #tpu.dimension_semantics<parallel>], iteration_bounds = array<i64: 1, 1>, scalar_prefetch = 0 : i64, scratch_operands = 0 : i64, tpu.core_type = #tpu.core_type<tc>, window_params = [{transform_indices = @transform_0, window_bounds = array<i64: 16, 32>}, {pipeline_mode = #tpu.pipeline_mode<synchronous>, transform_indices = @transform_1, window_bounds = array<i64: 32, 128>}, {pipeline_mode = #tpu.pipeline_mode<synchronous>, transform_indices = @transform_2, window_bounds = array<i64: 1, 128>}, {transform_indices = @transform_3, window_bounds = array<i64: 16, 128>}]} {
    %c0 = arith.constant 0 : index
    %c0_0 = arith.constant 0 : index
    %0 = vector.load %arg2[%c0, %c0_0] : memref<16x32xbf16, #tpu.memory_space<vmem>>, vector<16x32xbf16>
    %c0_1 = arith.constant 0 : index
    %c0_2 = arith.constant 0 : index
    %1 = vector.load %arg3[%c0_1, %c0_2] : memref<32x128xbf16, #tpu.memory_space<vmem>>, vector<32x128xbf16>
    %cst = arith.constant dense<0.000000e+00> : vector<16x128xf32>
    %2 = tpu.matmul %0, %1, %cst {dimension_numbers = #tpu.dot_dimension_numbers<[1], [0], [0], [1], [0, 0, 1, 1], [], []>} : vector<16x32xbf16>, vector<32x128xbf16>, vector<16x128xf32> -> vector<16x128xf32>
    %c0_3 = arith.constant 0 : index
    %c0_4 = arith.constant 0 : index
    %3 = vector.load %arg4[%c0_3, %c0_4] : memref<1x128xf32, #tpu.memory_space<vmem>>, vector<1x128xf32>
    %4 = vector.broadcast %3 : vector<1x128xf32> to vector<16x128xf32>
    %5 = arith.addf %2, %4 : vector<16x128xf32>
    %c0_5 = arith.constant 0 : index
    %c0_6 = arith.constant 0 : index
    %6 = vector.load %arg5[%c0_5, %c0_6] : memref<16x128xf32, #tpu.memory_space<vmem>>, vector<16x128xf32>
    tpu.vector_store %arg5[%c0_5, %c0_6], %5 {strides = array<i32>} : memref<16x128xf32, #tpu.memory_space<vmem>>, vector<16x128xf32>,
    return
  }
  func.func @transform_0(%arg0: i32, %arg1: i32) -> (i32, i32) {
    %c0_i32 = arith.constant 0 : i32
    %c0_i32_0 = arith.constant 0 : i32
    return %arg0, %c0_i32 : i32, i32
  }
  func.func @transform_1(%arg0: i32, %arg1: i32) -> (i32, i32) {
    %c0_i32 = arith.constant 0 : i32
    %c0_i32_0 = arith.constant 0 : i32
    return %c0_i32, %arg1 : i32, i32
  }
  func.func @transform_2(%arg0: i32, %arg1: i32) -> (i32, i32) {
    %c0_i32 = arith.constant 0 : i32
    %c0_i32_0 = arith.constant 0 : i32
    return %c0_i32, %arg1 : i32, i32
  }
  func.func @transform_3(%arg0: i32, %arg1: i32) -> (i32, i32) {
    %c0_i32 = arith.constant 0 : i32
    return %arg0, %arg1 : i32, i32
  }
}

</mosaic_0001>

<bundles_post_ra>
// kernel: rnn_model_forward.4
= control target key start
LH: loop header
LB: loop body
LE: loop exit
PB: predicated region body
PF: predicated region fallthrough
CT: control target
= control target key end

     0   :  { %vm42_vm0 = vcmask 261120   ;;  %vm62_vm1 = vcmask 257024   ;;  %s127_s1 = inlined_call_operand.vmem [shape: bf16[32,32], index: 1, kind: input, shape index: {}]   ;;  %s128_s0 = inlined_call_operand.vmem [shape: bf16[16,32], index: 0, kind: input, shape index: {}]   ;;  %s129_s2 = inlined_call_operand.vmem [shape: f32[1,32], index: 2, kind: input, shape index: {}]   ;;  %s130_s3 = inlined_call_operand.vmem [shape: bf16[16,32], index: 3, kind: output, shape index: {}]  }
   0x1   :  { %v79_v0 = vld [vmem:[%s127_s1 + $0x8] sm:$0xff]  ;;  %v81_v1 = vld [vmem:[%s128_s0] sm:$0xff]  }
   0x2   :  { %v82_v2 = vunpack.c.l.bf16 %v81_v1  ;;  %v83_v3 = vunpack.c.h.bf16 %v81_v1  ;;  %52 = vmatpush.bf16.msra.mxu0 %v79_v0  ;;  %v78_v4 = vld [vmem:[%s127_s1] sm:$0xff] }
   0x3   :  { %v84_v8 = vld [vmem:[%s129_s2] ss:$0 sm:$0xff] }
   0x4   :  { %85 = vtanh.f32 %v82_v2 }
   0x5   :  { %87 = vtanh.f32 %v83_v3 }
   0x6   :  { %53 = vmatpush.bf16.msra.mxu0 %v78_v4 }
   0xa   :  { %v86_v5 = vpop.eup %85 }
   0xb   :  { %v88_v6 = vpop.eup %87 }
   0xc   :  { %v21_v7 = vpack.c.bf16 %v88_v6, %v86_v5 }
   0xe   :  { %77 = vmatmul.msk.bf16.vlgmr.msra.gmra.mxu0 %vm42_vm0, %v21_v7 }
  0x8b   :  { %v55_v9 = vpop.f32.mrf.mxu0 }
  0x8c   :  { %v56_v10 = vadd.f32 %v84_v8, %v55_v9 }
  0x8e   :  { %v60_v11 = vpack.c.bf16 %v56_v10, %v56_v10 }
  0x90   :  { %63 = vst.msk [vmem:[%s130_s3] sm:$0xf] %vm62_vm1, %v60_v11 }
  0x93   :  { %v57_v12 = vpop.f32.mrf.mxu0 }
  0x94   :  { %v58_v13 = vadd.f32 %v84_v8, %v57_v12 }
  0x96   :  { %v61_v14 = vpack.c.bf16 %v58_v13, %v58_v13 }
  0x98   :  { %64 = vst.msk [vmem:[%s130_s3 + $0x4] sm:$0xf] %vm62_vm1, %v61_v14 }

// kernel: rnn_model_forward.7
= control target key start
LH: loop header
LB: loop body
LE: loop exit
PB: predicated region body
PF: predicated region fallthrough
CT: control target
= control target key end

     0   :  { %s165_s0 = inlined_call_operand.vmem [shape: bf16[16,32], index: 0, kind: input, shape index: {}]   ;;  %s166_s1 = inlined_call_operand.vmem [shape: bf16[32,128], index: 1, kind: input, shape index: {}]   ;;  %s167_s2 = inlined_call_operand.vmem [shape: f32[1,128], index: 2, kind: input, shape index: {}]   ;;  %s168_s3 = inlined_call_operand.hbm [shape: f32[16,128], index: 3, kind: output, shape index: {}]  }
   0x1   :  { %v96_v0 = vld [vmem:[%s166_s1 + $0x8] sm:$0xff] }
   0x2   :  { %8 = vsyncpa [#allocation3], 0  ;;  %53 = vmatpush.bf16.msra.mxu0 %v96_v0  ;;  %v95_v1 = vld [vmem:[%s166_s1] sm:$0xff]  ;;  %vm43_vm0 = vcmask 261120   ;;  %s127_s20 = smov [#allocation2]   ;;  %s69_s1 = sshll.u32 %s168_s3, 4  ;;  %s70_s1 = int_to_ptr.hbm [resolvable:$true] %s69_s1 }
   0x3   :  { %v94_v2 = vld [vmem:[%s165_s0] sm:$0xff]  ;;  %s67_s21 = sshll.u32 %s127_s20, 4  ;;  %s128_s0 = smov 128   ;;  %s68_s21 = int_to_ptr.vmem [resolvable:$true] %s67_s21 }
   0x4   :  { %v100_v3 = vld [vmem:[%s167_s2] ss:$0 sm:$0xff]  ;;  %s129_s24 = smov 8  }
   0x6   :  { %54 = vmatpush.bf16.msra.mxu0 %v95_v1 }
   0x9   :  { %93 = vmatmul.msk.bf16.vlgmr.msra.gmra.mxu0 %vm43_vm0, %v94_v2 }
  0x86   :  { %v56_v4 = vpop.f32.mrf.mxu0 }
  0x87   :  { %v57_v5 = vadd.f32 %v100_v3, %v56_v4 }
  0x89   :  { %61 = vst [vmem:[#allocation2] sm:$0xff] %v57_v5 }
  0x8e   :  { %v58_v6 = vpop.f32.mrf.mxu0 }
  0x8f   :  { %v59_v7 = vadd.f32 %v100_v3, %v58_v6 }
  0x91   :  { %62 = vst [vmem:[#allocation2 + $0x8] sm:$0xff] %v59_v7 }
  0x92   :  { %75 = dma.vmem_to_hbm [thread:$0]  %s68_s21, 256, %s70_s1, [#allocation3], %s128_s0, %s128_s0, %s129_s24  }
  0x93   :  { %125 = dma.done.wait [#allocation3], 256  }
  0x94   :  { %126 = vsyncadd [#allocation3], 4294967040 }
  0x95   :  { %80 = vsyncpa [#allocation3], 1 }

// kernel: rnn_model_forward.5
= control target key start
LH: loop header
LB: loop body
LE: loop exit
PB: predicated region body
PF: predicated region fallthrough
CT: control target
= control target key end

     0   :  { %vm28_vm0 = vcmask 254976   ;;  %vm55_vm1 = vcmask 261120   ;;  %vm107_vm2 = vcmask 253952   ;;  %s637_s2 = inlined_call_operand.vmem [shape: bf16[32,32], index: 2, kind: input, shape index: {}]   ;;  %s638_s1 = inlined_call_operand.vmem [shape: f32[2,32], index: 1, kind: input, shape index: {}]   ;;  %s639_s4 = inlined_call_operand.vmem [shape: f32[1,32], index: 4, kind: input, shape index: {}]   ;;  %s640_s3 = inlined_call_operand.vmem [shape: bf16[32,32], index: 3, kind: input, shape index: {}]   ;;  %s641_s0 = inlined_call_operand.vmem [shape: bf16[8,2,32], index: 0, kind: input, shape index: {}]   ;;  %s642_s5 = inlined_call_operand.vmem [shape: bf16[8,2,32], index: 5, kind: output, shape index: {0}]   ;;  %s643_s6 = inlined_call_operand.vmem [shape: f32[2,32], index: 6, kind: output, shape index: {1}]  }
   0x1   :  { %v494_v0 = vld [vmem:[%s637_s2 + $0x8] sm:$0xff]  ;;  %v27_v1 = vld [vmem:[%s638_s1] sm:$0x3]  ;;  %v411_v26 = vld [vmem:[%s641_s0 + $0x2] sm:$0x1] }
   0x2   :  { %29 = vst.msk [vmem:[#allocation2] sm:$0x3] %vm28_vm0, %v27_v1  ;;  %65 = vmatpush.bf16.msra.mxu0 %v494_v0  ;;  %v504_v2 = vld [vmem:[%s637_s2] sm:$0xff]  ;;  %118 = vmatpush.bf16.msra.mxu2 %v494_v0  ;;  %v519_v5 = vld [vmem:[%s640_s3 + $0x8] sm:$0xff]  ;;  %v149_v27 = vunpack.c.l.bf16 %v411_v26 }
   0x3   :  { %99 = vmatpush.bf16.msra.mxu1 %v519_v5  ;;  %137 = vmatpush.bf16.msra.mxu3 %v519_v5  ;;  %v526_v6 = vld [vmem:[%s640_s3] sm:$0xff] }
   0x4   :  { %v41_v7 = vld [vmem:[%s641_s0] sm:$0x1]  ;;  %v407_v16 = vld [vmem:[%s641_s0 + $0x1] sm:$0x1]  ;;  %v415_v38 = vld [vmem:[%s641_s0 + $0x3] sm:$0x1] }
   0x5   :  { %v42_v8 = vunpack.c.l.bf16 %v41_v7  ;;  %v546_v14 = vld [vmem:[%s639_s4] ss:$0 sm:$0xff]  ;;  %v111_v19 = vunpack.c.l.bf16 %v407_v16  ;;  %v187_v41 = vunpack.c.l.bf16 %v415_v38  ;;  %v419_v48 = vld [vmem:[%s641_s0 + $0x4] sm:$0x1]  ;;  %v423_v60 = vld [vmem:[%s641_s0 + $0x5] sm:$0x1] }
   0x6   :  { %66 = vmatpush.bf16.msra.mxu0 %v504_v2  ;;  %119 = vmatpush.bf16.msra.mxu2 %v504_v2  ;;  %v225_v49 = vunpack.c.l.bf16 %v419_v48  ;;  %v263_v63 = vunpack.c.l.bf16 %v423_v60 }
   0x7   :  { %100 = vmatpush.bf16.msra.mxu1 %v526_v6  ;;  %138 = vmatpush.bf16.msra.mxu3 %v526_v6 }
   0x9   :  { %v39_v3 = vld [vmem:[#allocation2] sm:$0x3] }
   0xa   :  { %156 = vmatpush.bf16.msrb.mxu0 %v494_v0  ;;  %194 = vmatpush.bf16.msrb.mxu2 %v494_v0  ;;  %v40_v4 = vpack.c.bf16 %v39_v3, %v39_v3 }
   0xb   :  { %175 = vmatpush.bf16.msrb.mxu1 %v519_v5  ;;  %213 = vmatpush.bf16.msrb.mxu3 %v519_v5 }
   0xc   :  { %397 = vmatmul.msk.bf16.vlgmr.msra.gmra.mxu0 %vm55_vm1, %v40_v4 }
   0xe   :  { %195 = vmatpush.bf16.msrb.mxu2 %v504_v2  ;;  %157 = vmatpush.bf16.msrb.mxu0 %v504_v2 }
   0xf   :  { %176 = vmatpush.bf16.msrb.mxu1 %v526_v6  ;;  %214 = vmatpush.bf16.msrb.mxu3 %v526_v6 }
  0x12   :  { %232 = vmatpush.bf16.msra.mxu0 %v494_v0 }
  0x16   :  { %233 = vmatpush.bf16.msra.mxu0 %v504_v2 }
  0x89   :  { %v68_v9 = vpop.f32.mrf.mxu0 }
  0x8a   :  { %v72_v10 = vadd.f32 %v68_v9, %v42_v8 }
  0x8c   :  { %440 = vtanh.f32 %v72_v10 }
  0x91   :  { %v70_v11 = vpop.f32.mrf.mxu0 }
  0x92   :  { %v441_v12 = vpop.eup %440 }
  0x93   :  { %v74_v13 = vpack.c.bf16 %v441_v12, %v441_v12 }
  0x95   :  { %406 = vmatmul.msk.bf16.vlgmr.msra.gmra.mxu1 %vm55_vm1, %v74_v13  ;;  %408 = vmatmul.msk.bf16.vlgmr.msra.gmra.mxu2 %vm55_vm1, %v74_v13 }
  0x96   :  { %270 = vmatpush.bf16.msra.mxu2 %v494_v0  ;;  %251 = vmatpush.bf16.msra.mxu1 %v519_v5 }
  0x9a   :  { %271 = vmatpush.bf16.msra.mxu2 %v504_v2  ;;  %252 = vmatpush.bf16.msra.mxu1 %v526_v6 }
 0x112   :  { %v102_v15 = vpop.f32.mrf.mxu1 }
 0x113   :  { %v103_v17 = vadd.f32 %v546_v14, %v102_v15 }
 0x115   :  { %v106_v18 = vpack.c.bf16 %v103_v17, %v103_v17 }
 0x117   :  { %108 = vst.msk [vmem:[%s642_s5] sm:$0x1] %vm107_vm2, %v106_v18 }
 0x118   :  { %v121_v20 = vpop.f32.mrf.mxu2 }
 0x119   :  { %v125_v21 = vadd.f32 %v121_v20, %v111_v19  ;;  %v431_v19 = vld [vmem:[%s641_s0 + $0x7] sm:$0x1] }
 0x11a   :  { %v104_v22 = vpop.f32.mrf.mxu1 }
 0x11b   :  { %442 = vtanh.f32 %v125_v21  ;;  %v339_v22 = vunpack.c.l.bf16 %v431_v19 }
 0x120   :  { %v123_v23 = vpop.f32.mrf.mxu2 }
 0x121   :  { %v443_v24 = vpop.eup %442 }
 0x122   :  { %v127_v25 = vpack.c.bf16 %v443_v24, %v443_v24 }
 0x124   :  { %409 = vmatmul.msk.bf16.vlgmr.msra.gmra.mxu3 %vm55_vm1, %v127_v25  ;;  %412 = vmatmul.msk.bf16.vlgmr.msrb.gmra.mxu0 %vm55_vm1, %v127_v25 }
 0x125   :  { %308 = vmatpush.bf16.msrb.mxu0 %v494_v0  ;;  %289 = vmatpush.bf16.msra.mxu3 %v519_v5 }
 0x129   :  { %309 = vmatpush.bf16.msrb.mxu0 %v504_v2  ;;  %290 = vmatpush.bf16.msra.mxu3 %v526_v6 }
 0x1a1   :  { %v159_v28 = vpop.f32.mrf.mxu0 }
 0x1a2   :  { %v163_v29 = vadd.f32 %v159_v28, %v149_v27 }
 0x1a4   :  { %444 = vtanh.f32 %v163_v29 }
 0x1a7   :  { %v140_v30 = vpop.f32.mrf.mxu3 }
 0x1a8   :  { %v141_v31 = vadd.f32 %v546_v14, %v140_v30 }
 0x1a9   :  { %v161_v32 = vpop.f32.mrf.mxu0 }
 0x1aa   :  { %v445_v33 = vpop.eup %444  ;;  %v144_v34 = vpack.c.bf16 %v141_v31, %v141_v31 }
 0x1ab   :  { %v165_v35 = vpack.c.bf16 %v445_v33, %v445_v33 }
 0x1ac   :  { %410 = vst.msk [vmem:[%s642_s5 + $0x1] sm:$0x1] %vm107_vm2, %v144_v34 }
 0x1ad   :  { %413 = vmatmul.msk.bf16.vlgmr.msrb.gmra.mxu1 %vm55_vm1, %v165_v35  ;;  %416 = vmatmul.msk.bf16.vlgmr.msrb.gmra.mxu2 %vm55_vm1, %v165_v35 }
 0x1ae   :  { %346 = vmatpush.bf16.msrb.mxu2 %v494_v0  ;;  %327 = vmatpush.bf16.msrb.mxu1 %v519_v5 }
 0x1af   :  { %v142_v36 = vpop.f32.mrf.mxu3 }
 0x1b2   :  { %347 = vmatpush.bf16.msrb.mxu2 %v504_v2  ;;  %328 = vmatpush.bf16.msrb.mxu1 %v526_v6 }
 0x22a   :  { %v178_v37 = vpop.f32.mrf.mxu1 }
 0x22b   :  { %v179_v39 = vadd.f32 %v546_v14, %v178_v37 }
 0x22d   :  { %v182_v40 = vpack.c.bf16 %v179_v39, %v179_v39 }
 0x22f   :  { %414 = vst.msk [vmem:[%s642_s5 + $0x2] sm:$0x1] %vm107_vm2, %v182_v40 }
 0x230   :  { %v197_v42 = vpop.f32.mrf.mxu2 }
 0x231   :  { %v201_v43 = vadd.f32 %v197_v42, %v187_v41 }
 0x232   :  { %v180_v44 = vpop.f32.mrf.mxu1 }
 0x233   :  { %446 = vtanh.f32 %v201_v43 }
 0x238   :  { %v199_v45 = vpop.f32.mrf.mxu2 }
 0x239   :  { %v447_v46 = vpop.eup %446 }
 0x23a   :  { %v203_v47 = vpack.c.bf16 %v447_v46, %v447_v46 }
 0x23c   :  { %417 = vmatmul.msk.bf16.vlgmr.msrb.gmra.mxu3 %vm55_vm1, %v203_v47  ;;  %420 = vmatmul.msk.bf16.vlgmr.msra.gmra.mxu0 %vm55_vm1, %v203_v47 }
 0x23d   :  { %365 = vmatpush.bf16.msrb.mxu3 %v519_v5 }
 0x241   :  { %366 = vmatpush.bf16.msrb.mxu3 %v526_v6  ;;  %v427_v6 = vld [vmem:[%s641_s0 + $0x6] sm:$0x1] }
 0x242   :  { %v301_v7 = vunpack.c.l.bf16 %v427_v6 }
 0x2b9   :  { %v235_v50 = vpop.f32.mrf.mxu0 }
 0x2ba   :  { %v239_v51 = vadd.f32 %v235_v50, %v225_v49 }
 0x2bc   :  { %448 = vtanh.f32 %v239_v51 }
 0x2bf   :  { %v216_v52 = vpop.f32.mrf.mxu3 }
 0x2c0   :  { %v217_v53 = vadd.f32 %v546_v14, %v216_v52 }
 0x2c1   :  { %v237_v54 = vpop.f32.mrf.mxu0 }
 0x2c2   :  { %v449_v55 = vpop.eup %448  ;;  %v220_v56 = vpack.c.bf16 %v217_v53, %v217_v53 }
 0x2c3   :  { %v241_v57 = vpack.c.bf16 %v449_v55, %v449_v55 }
 0x2c4   :  { %418 = vst.msk [vmem:[%s642_s5 + $0x3] sm:$0x1] %vm107_vm2, %v220_v56 }
 0x2c5   :  { %421 = vmatmul.msk.bf16.vlgmr.msra.gmra.mxu1 %vm55_vm1, %v241_v57  ;;  %424 = vmatmul.msk.bf16.vlgmr.msra.gmra.mxu2 %vm55_vm1, %v241_v57 }
 0x2c7   :  { %v218_v58 = vpop.f32.mrf.mxu3 }
 0x342   :  { %v254_v59 = vpop.f32.mrf.mxu1 }
 0x343   :  { %v255_v61 = vadd.f32 %v546_v14, %v254_v59 }
 0x345   :  { %v258_v62 = vpack.c.bf16 %v255_v61, %v255_v61 }
 0x347   :  { %422 = vst.msk [vmem:[%s642_s5 + $0x4] sm:$0x1] %vm107_vm2, %v258_v62 }
 0x348   :  { %v273_v0 = vpop.f32.mrf.mxu2 }
 0x349   :  { %v277_v1 = vadd.f32 %v273_v0, %v263_v63 }
 0x34a   :  { %v256_v2 = vpop.f32.mrf.mxu1 }
 0x34b   :  { %450 = vtanh.f32 %v277_v1 }
 0x350   :  { %v275_v3 = vpop.f32.mrf.mxu2 }
 0x351   :  { %v451_v4 = vpop.eup %450 }
 0x352   :  { %v279_v5 = vpack.c.bf16 %v451_v4, %v451_v4 }
 0x354   :  { %425 = vmatmul.msk.bf16.vlgmr.msra.gmra.mxu3 %vm55_vm1, %v279_v5  ;;  %428 = vmatmul.msk.bf16.vlgmr.msrb.gmra.mxu0 %vm55_vm1, %v279_v5 }
 0x3d1   :  { %v311_v8 = vpop.f32.mrf.mxu0 }
 0x3d2   :  { %v315_v9 = vadd.f32 %v311_v8, %v301_v7 }
 0x3d4   :  { %452 = vtanh.f32 %v315_v9 }
 0x3d7   :  { %v292_v10 = vpop.f32.mrf.mxu3 }
 0x3d8   :  { %v293_v11 = vadd.f32 %v546_v14, %v292_v10 }
 0x3d9   :  { %v313_v12 = vpop.f32.mrf.mxu0 }
 0x3da   :  { %v453_v13 = vpop.eup %452  ;;  %v296_v15 = vpack.c.bf16 %v293_v11, %v293_v11 }
 0x3db   :  { %v317_v16 = vpack.c.bf16 %v453_v13, %v453_v13 }
 0x3dc   :  { %426 = vst.msk [vmem:[%s642_s5 + $0x5] sm:$0x1] %vm107_vm2, %v296_v15 }
 0x3dd   :  { %429 = vmatmul.msk.bf16.vlgmr.msrb.gmra.mxu1 %vm55_vm1, %v317_v16  ;;  %432 = vmatmul.msk.bf16.vlgmr.msrb.gmra.mxu2 %vm55_vm1, %v317_v16 }
 0x3df   :  { %v294_v17 = vpop.f32.mrf.mxu3 }
 0x45a   :  { %v330_v18 = vpop.f32.mrf.mxu1 }
 0x45b   :  { %v331_v20 = vadd.f32 %v546_v14, %v330_v18 }
 0x45d   :  { %v334_v21 = vpack.c.bf16 %v331_v20, %v331_v20 }
 0x45f   :  { %430 = vst.msk [vmem:[%s642_s5 + $0x6] sm:$0x1] %vm107_vm2, %v334_v21 }
 0x460   :  { %v349_v23 = vpop.f32.mrf.mxu2 }
 0x461   :  { %v353_v24 = vadd.f32 %v349_v23, %v339_v22 }
 0x462   :  { %v332_v25 = vpop.f32.mrf.mxu1 }
 0x463   :  { %454 = vtanh.f32 %v353_v24 }
 0x468   :  { %v351_v26 = vpop.f32.mrf.mxu2 }
 0x469   :  { %v455_v27 = vpop.eup %454 }
 0x46a   :  { %376 = vst.msk [vmem:[#allocation2] sm:$0x3] %vm28_vm0, %v455_v27  ;;  %v355_v28 = vpack.c.bf16 %v455_v27, %v455_v27 }
 0x46b   :  { %380 = vst.msk [vmem:[%s643_s6] sm:$0x3] %vm28_vm0, %v455_v27 }
 0x46c   :  { %433 = vmatmul.msk.bf16.vlgmr.msrb.gmra.mxu3 %vm55_vm1, %v355_v28 }
 0x4ef   :  { %v368_v29 = vpop.f32.mrf.mxu3 }
 0x4f0   :  { %v369_v30 = vadd.f32 %v546_v14, %v368_v29 }
 0x4f2   :  { %v372_v31 = vpack.c.bf16 %v369_v30, %v369_v30 }
 0x4f4   :  { %434 = vst.msk [vmem:[%s642_s5 + $0x7] sm:$0x1] %vm107_vm2, %v372_v31 }
 0x4f7   :  { %v370_v32 = vpop.f32.mrf.mxu3 }

// kernel: rnn_model_forward.6
= control target key start
LH: loop header
LB: loop body
LE: loop exit
PB: predicated region body
PF: predicated region fallthrough
CT: control target
= control target key end

     0   :  { %vm22_vm0 = vcmask 254976   ;;  %vm44_vm1 = vcmask 261120   ;;  %vm64_vm2 = vcmask 253952   ;;  %s400_s2 = inlined_call_operand.vmem [shape: bf16[32,32], index: 2, kind: input, shape index: {}]   ;;  %s401_s1 = inlined_call_operand.vmem [shape: f32[2,32], index: 1, kind: input, shape index: {}]   ;;  %s402_s0 = inlined_call_operand.vmem [shape: bf16[8,2,32], index: 0, kind: input, shape index: {}]   ;;  %s403_s3 = inlined_call_operand.vmem [shape: bf16[8,2,32], index: 3, kind: output, shape index: {0}]   ;;  %s404_s4 = inlined_call_operand.vmem [shape: f32[2,32], index: 4, kind: output, shape index: {1}]  }
   0x1   :  { %v279_v0 = vld [vmem:[%s400_s2 + $0x8] sm:$0xff]  ;;  %v21_v1 = vld [vmem:[%s401_s1] sm:$0x3]  ;;  %v260_v19 = vld [vmem:[%s402_s0 + $0x2] sm:$0x1] }
   0x2   :  { %23 = vst.msk [vmem:[#allocation2] sm:$0x3] %vm22_vm0, %v21_v1  ;;  %54 = vmatpush.bf16.msra.mxu0 %v279_v0  ;;  %v278_v2 = vld [vmem:[%s400_s2] sm:$0xff]  ;;  %78 = vmatpush.bf16.msra.mxu1 %v279_v0  ;;  %v92_v20 = vunpack.c.l.bf16 %v260_v19 }
   0x3   :  { %102 = vmatpush.bf16.msra.mxu2 %v279_v0  ;;  %126 = vmatpush.bf16.msra.mxu3 %v279_v0  ;;  %v30_v5 = vld [vmem:[%s402_s0] sm:$0x1]  ;;  %v257_v12 = vld [vmem:[%s402_s0 + $0x1] sm:$0x1]  ;;  %v263_v26 = vld [vmem:[%s402_s0 + $0x3] sm:$0x1] }
   0x4   :  { %v31_v6 = vunpack.c.l.bf16 %v30_v5  ;;  %v68_v13 = vunpack.c.l.bf16 %v257_v12  ;;  %v116_v27 = vunpack.c.l.bf16 %v263_v26  ;;  %v266_v33 = vld [vmem:[%s402_s0 + $0x4] sm:$0x1]  ;;  %v269_v40 = vld [vmem:[%s402_s0 + $0x5] sm:$0x1]  ;;  %v272_v47 = vld [vmem:[%s402_s0 + $0x6] sm:$0x1] }
   0x5   :  { %v140_v34 = vunpack.c.l.bf16 %v266_v33  ;;  %v164_v41 = vunpack.c.l.bf16 %v269_v40  ;;  %v188_v48 = vunpack.c.l.bf16 %v272_v47  ;;  %v275_v54 = vld [vmem:[%s402_s0 + $0x7] sm:$0x1] }
   0x6   :  { %55 = vmatpush.bf16.msra.mxu0 %v278_v2  ;;  %79 = vmatpush.bf16.msra.mxu1 %v278_v2  ;;  %v212_v55 = vunpack.c.l.bf16 %v275_v54 }
   0x7   :  { %103 = vmatpush.bf16.msra.mxu2 %v278_v2  ;;  %127 = vmatpush.bf16.msra.mxu3 %v278_v2 }
   0x9   :  { %v28_v3 = vld [vmem:[#allocation2] sm:$0x3] }
   0xa   :  { %150 = vmatpush.bf16.msrb.mxu0 %v279_v0  ;;  %174 = vmatpush.bf16.msrb.mxu1 %v279_v0  ;;  %v29_v4 = vpack.c.bf16 %v28_v3, %v28_v3 }
   0xb   :  { %198 = vmatpush.bf16.msrb.mxu2 %v279_v0  ;;  %222 = vmatpush.bf16.msrb.mxu3 %v279_v0 }
   0xc   :  { %256 = vmatmul.msk.bf16.vlgmr.msra.gmra.mxu0 %vm44_vm1, %v29_v4 }
   0xe   :  { %151 = vmatpush.bf16.msrb.mxu0 %v278_v2  ;;  %175 = vmatpush.bf16.msrb.mxu1 %v278_v2 }
   0xf   :  { %199 = vmatpush.bf16.msrb.mxu2 %v278_v2  ;;  %223 = vmatpush.bf16.msrb.mxu3 %v278_v2 }
  0x89   :  { %v57_v7 = vpop.f32.mrf.mxu0 }
  0x8a   :  { %v61_v8 = vadd.f32 %v57_v7, %v31_v6 }
  0x8c   :  { %280 = vtanh.f32 %v61_v8 }
  0x91   :  { %v59_v9 = vpop.f32.mrf.mxu0 }
  0x92   :  { %v281_v10 = vpop.eup %280 }
  0x93   :  { %v63_v11 = vpack.c.bf16 %v281_v10, %v281_v10 }
  0x95   :  { %65 = vst.msk [vmem:[%s403_s3] sm:$0x1] %vm64_vm2, %v63_v11  ;;  %258 = vmatmul.msk.bf16.vlgmr.msra.gmra.mxu1 %vm44_vm1, %v63_v11 }
 0x112   :  { %v81_v14 = vpop.f32.mrf.mxu1 }
 0x113   :  { %v85_v15 = vadd.f32 %v81_v14, %v68_v13 }
 0x115   :  { %282 = vtanh.f32 %v85_v15 }
 0x11a   :  { %v83_v16 = vpop.f32.mrf.mxu1 }
 0x11b   :  { %v283_v17 = vpop.eup %282 }
 0x11c   :  { %v87_v18 = vpack.c.bf16 %v283_v17, %v283_v17 }
 0x11e   :  { %259 = vst.msk [vmem:[%s403_s3 + $0x1] sm:$0x1] %vm64_vm2, %v87_v18  ;;  %261 = vmatmul.msk.bf16.vlgmr.msra.gmra.mxu2 %vm44_vm1, %v87_v18 }
 0x1a1   :  { %v105_v21 = vpop.f32.mrf.mxu2 }
 0x1a2   :  { %v109_v22 = vadd.f32 %v105_v21, %v92_v20 }
 0x1a4   :  { %284 = vtanh.f32 %v109_v22 }
 0x1a9   :  { %v107_v23 = vpop.f32.mrf.mxu2 }
 0x1aa   :  { %v285_v24 = vpop.eup %284 }
 0x1ab   :  { %v111_v25 = vpack.c.bf16 %v285_v24, %v285_v24 }
 0x1ad   :  { %262 = vst.msk [vmem:[%s403_s3 + $0x2] sm:$0x1] %vm64_vm2, %v111_v25  ;;  %264 = vmatmul.msk.bf16.vlgmr.msra.gmra.mxu3 %vm44_vm1, %v111_v25 }
 0x230   :  { %v129_v28 = vpop.f32.mrf.mxu3 }
 0x231   :  { %v133_v29 = vadd.f32 %v129_v28, %v116_v27 }
 0x233   :  { %286 = vtanh.f32 %v133_v29 }
 0x238   :  { %v131_v30 = vpop.f32.mrf.mxu3 }
 0x239   :  { %v287_v31 = vpop.eup %286 }
 0x23a   :  { %v135_v32 = vpack.c.bf16 %v287_v31, %v287_v31 }
 0x23c   :  { %265 = vst.msk [vmem:[%s403_s3 + $0x3] sm:$0x1] %vm64_vm2, %v135_v32  ;;  %267 = vmatmul.msk.bf16.vlgmr.msrb.gmra.mxu0 %vm44_vm1, %v135_v32 }
 0x2b9   :  { %v153_v35 = vpop.f32.mrf.mxu0 }
 0x2ba   :  { %v157_v36 = vadd.f32 %v153_v35, %v140_v34 }
 0x2bc   :  { %288 = vtanh.f32 %v157_v36 }
 0x2c1   :  { %v155_v37 = vpop.f32.mrf.mxu0 }
 0x2c2   :  { %v289_v38 = vpop.eup %288 }
 0x2c3   :  { %v159_v39 = vpack.c.bf16 %v289_v38, %v289_v38 }
 0x2c5   :  { %268 = vst.msk [vmem:[%s403_s3 + $0x4] sm:$0x1] %vm64_vm2, %v159_v39  ;;  %270 = vmatmul.msk.bf16.vlgmr.msrb.gmra.mxu1 %vm44_vm1, %v159_v39 }
 0x342   :  { %v177_v42 = vpop.f32.mrf.mxu1 }
 0x343   :  { %v181_v43 = vadd.f32 %v177_v42, %v164_v41 }
 0x345   :  { %290 = vtanh.f32 %v181_v43 }
 0x34a   :  { %v179_v44 = vpop.f32.mrf.mxu1 }
 0x34b   :  { %v291_v45 = vpop.eup %290 }
 0x34c   :  { %v183_v46 = vpack.c.bf16 %v291_v45, %v291_v45 }
 0x34e   :  { %271 = vst.msk [vmem:[%s403_s3 + $0x5] sm:$0x1] %vm64_vm2, %v183_v46  ;;  %273 = vmatmul.msk.bf16.vlgmr.msrb.gmra.mxu2 %vm44_vm1, %v183_v46 }
 0x3d1   :  { %v201_v49 = vpop.f32.mrf.mxu2 }
 0x3d2   :  { %v205_v50 = vadd.f32 %v201_v49, %v188_v48 }
 0x3d4   :  { %292 = vtanh.f32 %v205_v50 }
 0x3d9   :  { %v203_v51 = vpop.f32.mrf.mxu2 }
 0x3da   :  { %v293_v52 = vpop.eup %292 }
 0x3db   :  { %v207_v53 = vpack.c.bf16 %v293_v52, %v293_v52 }
 0x3dd   :  { %274 = vst.msk [vmem:[%s403_s3 + $0x6] sm:$0x1] %vm64_vm2, %v207_v53  ;;  %276 = vmatmul.msk.bf16.vlgmr.msrb.gmra.mxu3 %vm44_vm1, %v207_v53 }
 0x460   :  { %v225_v56 = vpop.f32.mrf.mxu3 }
 0x461   :  { %v229_v57 = vadd.f32 %v225_v56, %v212_v55 }
 0x463   :  { %294 = vtanh.f32 %v229_v57 }
 0x468   :  { %v227_v58 = vpop.f32.mrf.mxu3 }
 0x469   :  { %v295_v59 = vpop.eup %294 }
 0x46a   :  { %v231_v60 = vpack.c.bf16 %v295_v59, %v295_v59  ;;  %235 = vst.msk [vmem:[#allocation2] sm:$0x3] %vm22_vm0, %v295_v59 }
 0x46b   :  { %239 = vst.msk [vmem:[%s404_s4] sm:$0x3] %vm22_vm0, %v295_v59 }
 0x46c   :  { %277 = vst.msk [vmem:[%s403_s3 + $0x7] sm:$0x1] %vm64_vm2, %v231_v60 }

</bundles_post_ra>
